<compile_context>
chip_gen: v5e
topology: v5e:2x2
jax: 0.10.0
libtpu: 0.0.40
codegen_flags: <defaults>
</compile_context>

<pallas_src>
import functools

import jax
import jax.numpy as jnp
from jax import lax
from jax.experimental import pallas as pl
from jax.experimental.pallas import tpu as pltpu


_VMEM_LIMIT = 48 * 1024 * 1024   # explicit scoped-VMEM budget; fits v7x (64 MiB physical)


# ----------------------------- tiling helper -----------------------------

def _pick_tile(dim, target, align):
    """Largest tile <= target that is a multiple of `align` and divides `dim`.
    Falls back to the full dim (always legal: block == array extent)."""
    if dim <= target:
        return dim
    t = (min(target, dim) // align) * align
    while t >= align:
        if dim % t == 0:
            return t
        t -= align
    return dim


# ----------------------------- Pallas kernels -----------------------------

def _matmul_kernel(x_ref, w_ref, b_ref, o_ref, acc_ref, *, activation):
    # o = act(x @ w + b); x tile cast to bf16 (no-op if already bf16), w bf16,
    # f32 accumulation, output stored in o_ref.dtype (bf16 for matmul-only consumers).
    k = pl.program_id(2)

    @pl.when(k == 0)
    def _():
        acc_ref[...] = jnp.zeros_like(acc_ref)

    acc_ref[...] += jnp.dot(
        x_ref[...].astype(jnp.bfloat16), w_ref[...],
        preferred_element_type=jnp.float32)

    @pl.when(k == pl.num_programs(2) - 1)
    def _():
        y = acc_ref[...] + b_ref[...]
        if activation == "gelu":  # exact erf GELU (HF "gelu"), computed in f32
            y = 0.5 * y * (1.0 + lax.erf(y * 0.7071067811865476))
        o_ref[...] = y.astype(o_ref.dtype)


def _matmul_res_ln_kernel(x_ref, w_ref, b_ref, r_ref, g_ref, bb_ref, o_ref, acc_ref):
    # Fused post-LN residual block: o = LayerNorm(x @ w + b + residual), f32 math.
    k = pl.program_id(1)

    @pl.when(k == 0)
    def _():
        acc_ref[...] = jnp.zeros_like(acc_ref)

    acc_ref[...] += jnp.dot(
        x_ref[...].astype(jnp.bfloat16), w_ref[...],
        preferred_element_type=jnp.float32)

    @pl.when(k == pl.num_programs(1) - 1)
    def _():
        y = acc_ref[...] + b_ref[...] + r_ref[...].astype(jnp.float32)
        mu = jnp.mean(y, axis=-1, keepdims=True)
        yc = y - mu
        var = jnp.mean(yc * yc, axis=-1, keepdims=True)
        o_ref[...] = (yc * lax.rsqrt(var + 1e-5) * g_ref[...]
                      + bb_ref[...]).astype(o_ref.dtype)


def _embed_add_ln_kernel(tok_ref, pos_ref, g_ref, b_ref, o_ref):
    # Fused: h = LayerNorm(tok_emb + pos_emb)  (one pass, no intermediate HBM tensor)
    x = tok_ref[...] + pos_ref[...]
    mu = jnp.mean(x, axis=-1, keepdims=True)
    xc = x - mu
    var = jnp.mean(xc * xc, axis=-1, keepdims=True)
    o_ref[...] = xc * lax.rsqrt(var + 1e-5) * g_ref[...] + b_ref[...]


def _attn_kernel(qkv_ref, bias_ref, o_ref, *, n_heads):
    # qkv block: (1, S, 3, H, Dh) bf16 fused-QKV slab for one batch element
    #            (softmax scale already folded into the Q projection weights).
    # bias block: (1, 1, S) additive key-padding bias (f32).
    # out block : (1, S, D) bf16, written per-head (no concat / relayout).
    # TODO(synk): no flash-style KV tiling and no (B, heads)/q-tile grid split yet;
    #             full per-head (S,S) scores are materialized (fine for short S).
    x = qkv_ref[0]                                           # (S, 3, H, Dh) bf16
    q = jnp.transpose(x[:, 0], (1, 0, 2))                    # (H, S, Dh)
    k = jnp.transpose(x[:, 1], (1, 0, 2))                    # (H, S, Dh)
    v = jnp.transpose(x[:, 2], (1, 0, 2))                    # (H, S, Dh)
    bias = bias_ref[0]                                       # (1, S) f32

    # Batched-over-heads score contraction keeps one continuous MXU pipeline.
    s = jnp.einsum("hqd,hkd->hqk", q, k,
                   preferred_element_type=jnp.float32)       # (H, S, S) f32
    s = s + bias                                             # broadcast over keys
    m = jnp.max(s, axis=-1, keepdims=True)
    p = jnp.exp(s - m)
    inv_l = pl.reciprocal(jnp.sum(p, axis=-1, keepdims=True), approx=True)  # (H, S, 1)

    o = jnp.einsum("hqk,hkd->hqd", p.astype(jnp.bfloat16), v,
                   preferred_element_type=jnp.float32)       # (H, S, Dh) f32
    o = o * inv_l                                            # scale PV output, not (S,S) probs

    dh = o.shape[-1]
    for h in range(n_heads):                                 # stores only (no compute/concat)
        o_ref[0, :, h * dh:(h + 1) * dh] = o[h].astype(o_ref.dtype)


# ----------------------------- kernel wrappers -----------------------------

def linear(x, w, b, *, activation=None, out_dtype=jnp.float32,
           tm=512, tn=1024, tk=512):
    """y = act(x @ w + b), tiled over (M, N, K) with a VMEM f32 accumulator."""
    M, K = x.shape
    N = w.shape[1]
    tm = _pick_tile(M, tm, 8)
    tn = _pick_tile(N, tn, 128)
    tk = _pick_tile(K, tk, 128)
    grid = (M // tm, N // tn, K // tk)
    return pl.pallas_call(
        functools.partial(_matmul_kernel, activation=activation),
        out_shape=jax.ShapeDtypeStruct((M, N), out_dtype),
        grid_spec=pltpu.PrefetchScalarGridSpec(
            num_scalar_prefetch=0,
            grid=grid,
            in_specs=[
                pl.BlockSpec((tm, tk), lambda i, j, k: (i, k)),
                pl.BlockSpec((tk, tn), lambda i, j, k: (k, j)),
                pl.BlockSpec((1, tn), lambda i, j, k: (0, j)),
            ],
            out_specs=pl.BlockSpec((tm, tn), lambda i, j, k: (i, j)),
            scratch_shapes=[pltpu.VMEM((tm, tn), jnp.float32)],
        ),
        compiler_params=pltpu.CompilerParams(
            dimension_semantics=("parallel", "parallel", "arbitrary"),
            vmem_limit_bytes=_VMEM_LIMIT),
    )(x, w, b.reshape(1, -1))


def linear_residual_layernorm(x, w, b, residual, g, beta, *, tm=256, tk=512):
    """y = LayerNorm(x @ w + b + residual). LN spans full N, so N is untiled."""
    M, K = x.shape
    N = w.shape[1]
    tm = _pick_tile(M, tm, 8)
    tk = _pick_tile(K, tk, 128)
    grid = (M // tm, K // tk)   # degenerate N axis dropped
    return pl.pallas_call(
        _matmul_res_ln_kernel,
        out_shape=jax.ShapeDtypeStruct((M, N), jnp.float32),
        grid_spec=pltpu.PrefetchScalarGridSpec(
            num_scalar_prefetch=0,
            grid=grid,
            in_specs=[
                pl.BlockSpec((tm, tk), lambda i, k: (i, k)),
                pl.BlockSpec((tk, N), lambda i, k: (k, 0)),
                pl.BlockSpec((1, N), lambda i, k: (0, 0)),
                pl.BlockSpec((tm, N), lambda i, k: (i, 0)),
                pl.BlockSpec((1, N), lambda i, k: (0, 0)),
                pl.BlockSpec((1, N), lambda i, k: (0, 0)),
            ],
            out_specs=pl.BlockSpec((tm, N), lambda i, k: (i, 0)),
            scratch_shapes=[pltpu.VMEM((tm, N), jnp.float32)],
        ),
        compiler_params=pltpu.CompilerParams(
            dimension_semantics=("parallel", "arbitrary"),
            vmem_limit_bytes=_VMEM_LIMIT),
    )(x, w, b.reshape(1, -1), residual, g.reshape(1, -1), beta.reshape(1, -1))


def embed_add_layernorm(tok, pos, g, b, *, ts=256):
    """h = LayerNorm(tok + pos) fused in one kernel. tok: (B,S,D), pos: (S,D)."""
    B, S, D = tok.shape
    ts = _pick_tile(S, ts, 8)
    return pl.pallas_call(
        _embed_add_ln_kernel,
        out_shape=jax.ShapeDtypeStruct((B, S, D), jnp.float32),
        grid=(B, S // ts),
        in_specs=[pl.BlockSpec((1, ts, D), lambda bi, si: (bi, si, 0)),
                  pl.BlockSpec((ts, D), lambda bi, si: (si, 0)),
                  pl.BlockSpec((1, D), lambda bi, si: (0, 0)),
                  pl.BlockSpec((1, D), lambda bi, si: (0, 0))],
        out_specs=pl.BlockSpec((1, ts, D), lambda bi, si: (bi, si, 0)),
        compiler_params=pltpu.CompilerParams(
            dimension_semantics=("parallel", "parallel"),
            vmem_limit_bytes=_VMEM_LIMIT),
    )(tok, pos, g.reshape(1, -1), b.reshape(1, -1))


def attention(qkv, mask_bias):
    # qkv: (B, S, 3, H, Dh) bf16 fused-projection slab; mask_bias: (B, 1, S) f32
    B, S, _, H, Dh = qkv.shape
    D = H * Dh
    return pl.pallas_call(
        functools.partial(_attn_kernel, n_heads=H),
        out_shape=jax.ShapeDtypeStruct((B, S, D), jnp.bfloat16),
        grid=(B,),
        in_specs=[pl.BlockSpec((1, S, 3, H, Dh), lambda b: (b, 0, 0, 0, 0)),
                  pl.BlockSpec((1, 1, S), lambda b: (b, 0, 0))],
        out_specs=pl.BlockSpec((1, S, D), lambda b: (b, 0, 0)),
        compiler_params=pltpu.CompilerParams(
            dimension_semantics=("parallel",),
            vmem_limit_bytes=_VMEM_LIMIT),
    )(qkv, mask_bias)


# ----------------------------- BART encoder -----------------------------

def init_params(key, *, vocab, max_pos, d_model, ffn, n_layers):
    def nrm(k, shape):
        return 0.02 * jax.random.normal(k, shape, dtype=jnp.float32)

    keys = jax.random.split(key, 3 + 8 * n_layers)
    p = {
        "tok_emb": nrm(keys[0], (vocab, d_model)),
        "pos_emb": nrm(keys[1], (max_pos + 2, d_model)),  # BART offset-2 table
        "ln_emb_g": jnp.ones((d_model,), jnp.float32),
        "ln_emb_b": jnp.zeros((d_model,), jnp.float32),
        "layers": [],
    }
    ki = 2
    for _ in range(n_layers):
        layer = {
            "q_w": nrm(keys[ki + 0], (d_model, d_model)),
            "q_b": jnp.zeros((d_model,), jnp.float32),
            "k_w": nrm(keys[ki + 1], (d_model, d_model)),
            "k_b": jnp.zeros((d_model,), jnp.float32),
            "v_w": nrm(keys[ki + 2], (d_model, d_model)),
            "v_b": jnp.zeros((d_model,), jnp.float32),
            "o_w": nrm(keys[ki + 3], (d_model, d_model)),
            "o_b": jnp.zeros((d_model,), jnp.float32),
            "ln1_g": jnp.ones((d_model,), jnp.float32),
            "ln1_b": jnp.zeros((d_model,), jnp.float32),
            "fc1_w": nrm(keys[ki + 4], (d_model, ffn)),
            "fc1_b": jnp.zeros((ffn,), jnp.float32),
            "fc2_w": nrm(keys[ki + 5], (ffn, d_model)),
            "fc2_b": jnp.zeros((d_model,), jnp.float32),
            "ln2_g": jnp.ones((d_model,), jnp.float32),
            "ln2_b": jnp.zeros((d_model,), jnp.float32),
        }
        ki += 8
        p["layers"].append(layer)
    return p


def prepare_params(p, *, n_heads):
    """Fuse Q/K/V weights (with the attention scale folded into Q) and pre-cast
    matmul weights to bf16 (done once, outside the forward pass)."""
    d_model = p["tok_emb"].shape[1]
    scale = float(d_model // n_heads) ** -0.5
    prep = {
        "tok_emb": p["tok_emb"].astype(jnp.float32),
        "pos_emb": p["pos_emb"].astype(jnp.float32),
        "ln_emb_g": p["ln_emb_g"],
        "ln_emb_b": p["ln_emb_b"],
        "layers": [],
    }
    for lp in p["layers"]:
        prep["layers"].append({
            "qkv_w": jnp.concatenate(
                [lp["q_w"] * scale, lp["k_w"], lp["v_w"]], axis=1).astype(jnp.bfloat16),
            "qkv_b": jnp.concatenate([lp["q_b"] * scale, lp["k_b"], lp["v_b"]]),
            "o_w": lp["o_w"].astype(jnp.bfloat16), "o_b": lp["o_b"],
            "ln1_g": lp["ln1_g"], "ln1_b": lp["ln1_b"],
            "fc1_w": lp["fc1_w"].astype(jnp.bfloat16), "fc1_b": lp["fc1_b"],
            "fc2_w": lp["fc2_w"].astype(jnp.bfloat16), "fc2_b": lp["fc2_b"],
            "ln2_g": lp["ln2_g"], "ln2_b": lp["ln2_b"],
        })
    return prep


def bart_pop_encoder(params, input_ids, attention_mask, *, n_heads):
    B, S = input_ids.shape
    D = params["tok_emb"].shape[1]
    Dh = D // n_heads

    # --- embeddings (add + LayerNorm fused into one kernel) ---
    # TODO(synk): token-embedding gather kept in plain JAX (no per-row DMA gather kernel).
    tok = jnp.take(params["tok_emb"], input_ids, axis=0)        # (B, S, D)
    pos = params["pos_emb"][2:2 + S]                            # static slice, BART offset 2
    h = embed_add_layernorm(tok, pos, params["ln_emb_g"], params["ln_emb_b"])
    h = h.reshape(B * S, D)                                     # residual stream stays f32

    # additive attention bias: 0 where attended, large negative where masked
    mask_bias = ((1.0 - attention_mask.astype(jnp.float32)) * -1e9).reshape(B, 1, S)

    for lp in params["layers"]:
        # ---- self attention ----
        residual = h
        qkv = linear(h, lp["qkv_w"], lp["qkv_b"], out_dtype=jnp.bfloat16)  # (B*S, 3D) bf16
        # TODO(synk): this head-split reshape is handled by XLA; it could be folded into
        #             the QKV matmul epilogue to save one (bf16) HBM round trip.
        qkv = qkv.reshape(B, S, 3, n_heads, Dh)
        attn = attention(qkv, mask_bias)                        # (B, S, D) bf16
        attn = attn.reshape(B * S, D)                           # leading-dim flatten
        h = linear_residual_layernorm(attn, lp["o_w"], lp["o_b"],
                                      residual, lp["ln1_g"], lp["ln1_b"])

        # ---- feed forward ----
        residual = h
        ff = linear(h, lp["fc1_w"], lp["fc1_b"],
                    activation="gelu", out_dtype=jnp.bfloat16)  # (B*S, FFN) bf16
        h = linear_residual_layernorm(ff, lp["fc2_w"], lp["fc2_b"],
                                      residual, lp["ln2_g"], lp["ln2_b"])

    return h.reshape(B, S, D)  # last_hidden_state, f32


# ----------------------------- main -----------------------------

if __name__ == "__main__":
    # small BART-like config
    VOCAB, MAX_POS = 50, 64
    D_MODEL, FFN, N_HEADS, N_LAYERS = 32, 64, 4, 2
    B, S = 2, 8

    key = jax.random.PRNGKey(0)
    k_params, k_ids = jax.random.split(key)

    raw_params = init_params(
        k_params, vocab=VOCAB, max_pos=MAX_POS, d_model=D_MODEL,
        ffn=FFN, n_layers=N_LAYERS,
    )
    params = prepare_params(raw_params, n_heads=N_HEADS)

    input_ids = jax.random.randint(k_ids, (B, S), 0, VOCAB, dtype=jnp.int32)
    attention_mask = jnp.ones((B, S), dtype=jnp.int32)
    attention_mask = attention_mask.at[1, S - 2:].set(0)  # pad tail of 2nd sequence

    fwd = jax.jit(functools.partial(bart_pop_encoder, n_heads=N_HEADS))
    last_hidden_state = fwd(params, input_ids, attention_mask)
    jax.block_until_ready(last_hidden_state)

    assert last_hidden_state.shape == (B, S, D_MODEL)
    assert last_hidden_state.dtype == jnp.float32
    assert bool(jnp.all(jnp.isfinite(last_hidden_state)))
    print("KERNEL_OK")
</pallas_src>

<mosaic_0001>
module attributes {stable_mosaic.version = 11 : i64} {
  func.func @_embed_add_ln_kernel(%arg0: i32, %arg1: i32, %arg2: memref<1x8x32xf32, #tpu.memory_space<vmem>>, %arg3: memref<8x32xf32, #tpu.memory_space<vmem>>, %arg4: memref<1x32xf32, #tpu.memory_space<vmem>>, %arg5: memref<1x32xf32, #tpu.memory_space<vmem>>, %arg6: memref<1x8x32xf32, #tpu.memory_space<vmem>>) attributes {dimension_semantics = [#tpu.dimension_semantics<parallel>, #tpu.dimension_semantics<parallel>], iteration_bounds = array<i64: 2, 1>, scalar_prefetch = 0 : i64, scratch_operands = 0 : i64, tpu.core_type = #tpu.core_type<tc>, window_params = [{transform_indices = @transform_0, window_bounds = array<i64: 1, 8, 32>}, {transform_indices = @transform_1, window_bounds = array<i64: 8, 32>}, {pipeline_mode = #tpu.pipeline_mode<synchronous>, transform_indices = @transform_2, window_bounds = array<i64: 1, 32>}, {pipeline_mode = #tpu.pipeline_mode<synchronous>, transform_indices = @transform_3, window_bounds = array<i64: 1, 32>}, {transform_indices = @transform_4, window_bounds = array<i64: 1, 8, 32>}]} {
    %c0 = arith.constant 0 : index
    %c0_0 = arith.constant 0 : index
    %c0_1 = arith.constant 0 : index
    %0 = vector.load %arg2[%c0, %c0_0, %c0_1] : memref<1x8x32xf32, #tpu.memory_space<vmem>>, vector<1x8x32xf32>
    %c0_2 = arith.constant 0 : index
    %c0_3 = arith.constant 0 : index
    %1 = vector.load %arg3[%c0_2, %c0_3] : memref<8x32xf32, #tpu.memory_space<vmem>>, vector<8x32xf32>
    %2 = vector.shape_cast %1 : vector<8x32xf32> to vector<1x8x32xf32>
    %3 = arith.addf %0, %2 : vector<1x8x32xf32>
    %cst = arith.constant dense<0.000000e+00> : vector<1x8xf32>
    %4 = vector.multi_reduction <add>, %3, %cst [2] : vector<1x8x32xf32> to vector<1x8xf32>
    %5 = vector.shape_cast %4 : vector<1x8xf32> to vector<1x8x1xf32>
    %cst_4 = arith.constant 3.200000e+01 : f32
    %6 = vector.broadcast %cst_4 : f32 to vector<1x8x1xf32>
    %7 = arith.divf %5, %6 : vector<1x8x1xf32>
    %8 = vector.broadcast %7 : vector<1x8x1xf32> to vector<1x8x32xf32>
    %9 = arith.subf %3, %8 : vector<1x8x32xf32>
    %10 = arith.mulf %9, %9 : vector<1x8x32xf32>
    %cst_5 = arith.constant dense<0.000000e+00> : vector<1x8xf32>
    %11 = vector.multi_reduction <add>, %10, %cst_5 [2] : vector<1x8x32xf32> to vector<1x8xf32>
    %12 = vector.shape_cast %11 : vector<1x8xf32> to vector<1x8x1xf32>
    %cst_6 = arith.constant 3.200000e+01 : f32
    %13 = vector.broadcast %cst_6 : f32 to vector<1x8x1xf32>
    %14 = arith.divf %12, %13 : vector<1x8x1xf32>
    %cst_7 = arith.constant 9.99999974E-6 : f32
    %15 = vector.broadcast %cst_7 : f32 to vector<1x8x1xf32>
    %16 = arith.addf %14, %15 : vector<1x8x1xf32>
    %17 = math.rsqrt %16 : vector<1x8x1xf32>
    %18 = vector.broadcast %17 : vector<1x8x1xf32> to vector<1x8x32xf32>
    %19 = arith.mulf %9, %18 : vector<1x8x32xf32>
    %c0_8 = arith.constant 0 : index
    %c0_9 = arith.constant 0 : index
    %20 = vector.load %arg4[%c0_8, %c0_9] : memref<1x32xf32, #tpu.memory_space<vmem>>, vector<1x32xf32>
    %21 = vector.shape_cast %20 : vector<1x32xf32> to vector<1x1x32xf32>
    %22 = vector.broadcast %21 : vector<1x1x32xf32> to vector<1x8x32xf32>
    %23 = arith.mulf %19, %22 : vector<1x8x32xf32>
    %c0_10 = arith.constant 0 : index
    %c0_11 = arith.constant 0 : index
    %24 = vector.load %arg5[%c0_10, %c0_11] : memref<1x32xf32, #tpu.memory_space<vmem>>, vector<1x32xf32>
    %25 = vector.shape_cast %24 : vector<1x32xf32> to vector<1x1x32xf32>
    %26 = vector.broadcast %25 : vector<1x1x32xf32> to vector<1x8x32xf32>
    %27 = arith.addf %23, %26 : vector<1x8x32xf32>
    %c0_12 = arith.constant 0 : index
    %c0_13 = arith.constant 0 : index
    %c0_14 = arith.constant 0 : index
    %28 = vector.load %arg6[%c0_12, %c0_13, %c0_14] : memref<1x8x32xf32, #tpu.memory_space<vmem>>, vector<1x8x32xf32>
    tpu.vector_store %arg6[%c0_12, %c0_13, %c0_14], %27 {strides = array<i32>} : memref<1x8x32xf32, #tpu.memory_space<vmem>>, vector<1x8x32xf32>,
    return
  }
  func.func @transform_0(%arg0: i32, %arg1: i32) -> (i32, i32, i32) {
    %c0_i32 = arith.constant 0 : i32
    %c0_i32_0 = arith.constant 0 : i32
    return %arg0, %arg1, %c0_i32 : i32, i32, i32
  }
  func.func @transform_1(%arg0: i32, %arg1: i32) -> (i32, i32) {
    %c0_i32 = arith.constant 0 : i32
    %c0_i32_0 = arith.constant 0 : i32
    return %arg1, %c0_i32 : i32, i32
  }
  func.func @transform_2(%arg0: i32, %arg1: i32) -> (i32, i32) {
    %c0_i32 = arith.constant 0 : i32
    %c0_i32_0 = arith.constant 0 : i32
    %c0_i32_1 = arith.constant 0 : i32
    return %c0_i32, %c0_i32_0 : i32, i32
  }
  func.func @transform_3(%arg0: i32, %arg1: i32) -> (i32, i32) {
    %c0_i32 = arith.constant 0 : i32
    %c0_i32_0 = arith.constant 0 : i32
    %c0_i32_1 = arith.constant 0 : i32
    return %c0_i32, %c0_i32_0 : i32, i32
  }
  func.func @transform_4(%arg0: i32, %arg1: i32) -> (i32, i32, i32) {
    %c0_i32 = arith.constant 0 : i32
    %c0_i32_0 = arith.constant 0 : i32
    return %arg0, %arg1, %c0_i32 : i32, i32, i32
  }
}

module attributes {stable_mosaic.version = 11 : i64} {
  func.func @_matmul_kernel(%arg0: i32, %arg1: i32, %arg2: i32, %arg3: memref<16x32xf32, #tpu.memory_space<vmem>>, %arg4: memref<32x96xbf16, #tpu.memory_space<vmem>>, %arg5: memref<1x96xf32, #tpu.memory_space<vmem>>, %arg6: memref<16x96xbf16, #tpu.memory_space<vmem>>, %arg7: memref<16x96xf32, #tpu.memory_space<vmem>>) attributes {dimension_semantics = [#tpu.dimension_semantics<parallel>, #tpu.dimension_semantics<parallel>, #tpu.dimension_semantics<arbitrary>], iteration_bounds = array<i64: 1, 1, 1>, scalar_prefetch = 0 : i64, scratch_operands = 1 : i64, tpu.core_type = #tpu.core_type<tc>, window_params = [{transform_indices = @transform_0, window_bounds = array<i64: 16, 32>}, {transform_indices = @transform_1, window_bounds = array<i64: 32, 96>}, {transform_indices = @transform_2, window_bounds = array<i64: 1, 96>}, {transform_indices = @transform_3, window_bounds = array<i64: 16, 96>}]} {
    %c0_i32 = arith.constant 0 : i32
    %0 = arith.cmpi eq, %arg2, %c0_i32 : i32
    %1 = arith.extui %0 : i1 to i32
    %c0_i32_0 = arith.constant 0 : i32
    %2 = arith.cmpi ne, %1, %c0_i32_0 : i32
    scf.if %2 {
      %cst_10 = arith.constant 0.000000e+00 : f32
      %13 = vector.broadcast %cst_10 : f32 to vector<16x96xf32>
      %c0_11 = arith.constant 0 : index
      %c0_12 = arith.constant 0 : index
      %14 = vector.load %arg7[%c0_11, %c0_12] : memref<16x96xf32, #tpu.memory_space<vmem>>, vector<16x96xf32>
      tpu.vector_store %arg7[%c0_11, %c0_12], %13 {strides = array<i32>} : memref<16x96xf32, #tpu.memory_space<vmem>>, vector<16x96xf32>,
    } else {
    }
    %c0 = arith.constant 0 : index
    %c0_1 = arith.constant 0 : index
    %3 = vector.load %arg7[%c0, %c0_1] : memref<16x96xf32, #tpu.memory_space<vmem>>, vector<16x96xf32>
    %c0_2 = arith.constant 0 : index
    %c0_3 = arith.constant 0 : index
    %4 = vector.load %arg3[%c0_2, %c0_3] : memref<16x32xf32, #tpu.memory_space<vmem>>, vector<16x32xf32>
    %5 = arith.truncf %4 : vector<16x32xf32> to vector<16x32xbf16>
    %c0_4 = arith.constant 0 : index
    %c0_5 = arith.constant 0 : index
    %6 = vector.load %arg4[%c0_4, %c0_5] : memref<32x96xbf16, #tpu.memory_space<vmem>>, vector<32x96xbf16>
    %cst = arith.constant dense<0.000000e+00> : vector<16x96xf32>
    %7 = tpu.matmul %5, %6, %cst {dimension_numbers = #tpu.dot_dimension_numbers<[1], [0], [0], [1], [0, 0, 1, 1], [], []>} : vector<16x32xbf16>, vector<32x96xbf16>, vector<16x96xf32> -> vector<16x96xf32>
    %8 = arith.addf %3, %7 : vector<16x96xf32>
    %c0_6 = arith.constant 0 : index
    %c0_7 = arith.constant 0 : index
    %9 = vector.load %arg7[%c0_6, %c0_7] : memref<16x96xf32, #tpu.memory_space<vmem>>, vector<16x96xf32>
    tpu.vector_store %arg7[%c0_6, %c0_7], %8 {strides = array<i32>} : memref<16x96xf32, #tpu.memory_space<vmem>>, vector<16x96xf32>,
    %c0_i32_8 = arith.constant 0 : i32
    %10 = arith.cmpi eq, %arg2, %c0_i32_8 : i32
    %11 = arith.extui %10 : i1 to i32
    %c0_i32_9 = arith.constant 0 : i32
    %12 = arith.cmpi ne, %11, %c0_i32_9 : i32
    scf.if %12 {
      %c0_10 = arith.constant 0 : index
      %c0_11 = arith.constant 0 : index
      %13 = vector.load %arg7[%c0_10, %c0_11] : memref<16x96xf32, #tpu.memory_space<vmem>>, vector<16x96xf32>
      %c0_12 = arith.constant 0 : index
      %c0_13 = arith.constant 0 : index
      %14 = vector.load %arg5[%c0_12, %c0_13] : memref<1x96xf32, #tpu.memory_space<vmem>>, vector<1x96xf32>
      %15 = vector.broadcast %14 : vector<1x96xf32> to vector<16x96xf32>
      %16 = arith.addf %13, %15 : vector<16x96xf32>
      %17 = arith.truncf %16 : vector<16x96xf32> to vector<16x96xbf16>
      %c0_14 = arith.constant 0 : index
      %c0_15 = arith.constant 0 : index
      %18 = vector.load %arg6[%c0_14, %c0_15] : memref<16x96xbf16, #tpu.memory_space<vmem>>, vector<16x96xbf16>
      tpu.vector_store %arg6[%c0_14, %c0_15], %17 {strides = array<i32>} : memref<16x96xbf16, #tpu.memory_space<vmem>>, vector<16x96xbf16>,
    } else {
    }
    return
  }
  func.func @transform_0(%arg0: i32, %arg1: i32, %arg2: i32) -> (i32, i32) {
    %c0_i32 = arith.constant 0 : i32
    return %arg0, %arg2 : i32, i32
  }
  func.func @transform_1(%arg0: i32, %arg1: i32, %arg2: i32) -> (i32, i32) {
    %c0_i32 = arith.constant 0 : i32
    return %arg2, %arg1 : i32, i32
  }
  func.func @transform_2(%arg0: i32, %arg1: i32, %arg2: i32) -> (i32, i32) {
    %c0_i32 = arith.constant 0 : i32
    %c0_i32_0 = arith.constant 0 : i32
    return %c0_i32, %arg1 : i32, i32
  }
  func.func @transform_3(%arg0: i32, %arg1: i32, %arg2: i32) -> (i32, i32) {
    %c0_i32 = arith.constant 0 : i32
    return %arg0, %arg1 : i32, i32
  }
}

module attributes {stable_mosaic.version = 11 : i64} {
  func.func @_attn_kernel(%arg0: i32, %arg1: memref<1x8x3x4x8xbf16, #tpu.memory_space<vmem>>, %arg2: memref<1x1x8xf32, #tpu.memory_space<vmem>>, %arg3: memref<1x8x32xbf16, #tpu.memory_space<vmem>>) attributes {dimension_semantics = [#tpu.dimension_semantics<parallel>], iteration_bounds = array<i64: 2>, scalar_prefetch = 0 : i64, scratch_operands = 0 : i64, tpu.core_type = #tpu.core_type<tc>, window_params = [{transform_indices = @transform_0, window_bounds = array<i64: 1, 8, 3, 4, 8>}, {transform_indices = @transform_1, window_bounds = array<i64: 1, 1, 8>}, {transform_indices = @transform_2, window_bounds = array<i64: 1, 8, 32>}]} {
    %c0 = arith.constant 0 : index
    %c0_0 = arith.constant 0 : index
    %c0_1 = arith.constant 0 : index
    %c0_2 = arith.constant 0 : index
    %c0_3 = arith.constant 0 : index
    %0 = vector.load %arg1[%c0, %c0_0, %c0_1, %c0_2, %c0_3] : memref<1x8x3x4x8xbf16, #tpu.memory_space<vmem>>, vector<1x8x3x4x8xbf16>
    %1 = vector.shape_cast %0 : vector<1x8x3x4x8xbf16> to vector<8x3x4x8xbf16>
    %2 = vector.extract_strided_slice %1 {offsets = [0, 0, 0, 0], sizes = [8, 1, 4, 8], strides = [1, 1, 1, 1]} : vector<8x3x4x8xbf16> to vector<8x1x4x8xbf16>
    %3 = vector.shape_cast %2 : vector<8x1x4x8xbf16> to vector<8x4x8xbf16>
    %4 = tpu.transpose %3, [1, 0, 2] : vector<8x4x8xbf16> -> vector<4x8x8xbf16>
    %5 = vector.extract_strided_slice %1 {offsets = [0, 1, 0, 0], sizes = [8, 1, 4, 8], strides = [1, 1, 1, 1]} : vector<8x3x4x8xbf16> to vector<8x1x4x8xbf16>
    %6 = vector.shape_cast %5 : vector<8x1x4x8xbf16> to vector<8x4x8xbf16>
    %7 = tpu.transpose %6, [1, 0, 2] : vector<8x4x8xbf16> -> vector<4x8x8xbf16>
    %8 = vector.extract_strided_slice %1 {offsets = [0, 2, 0, 0], sizes = [8, 1, 4, 8], strides = [1, 1, 1, 1]} : vector<8x3x4x8xbf16> to vector<8x1x4x8xbf16>
    %9 = vector.shape_cast %8 : vector<8x1x4x8xbf16> to vector<8x4x8xbf16>
    %10 = tpu.transpose %9, [1, 0, 2] : vector<8x4x8xbf16> -> vector<4x8x8xbf16>
    %c0_4 = arith.constant 0 : index
    %c0_5 = arith.constant 0 : index
    %c0_6 = arith.constant 0 : index
    %11 = vector.load %arg2[%c0_4, %c0_5, %c0_6] : memref<1x1x8xf32, #tpu.memory_space<vmem>>, vector<1x1x8xf32>
    %12 = vector.shape_cast %11 : vector<1x1x8xf32> to vector<1x8xf32>
    "tpu.trace_start"() <{level = 10 : i32, message = "hqd,hkd->hqk"}> : () -> ()
    %cst = arith.constant dense<0.000000e+00> : vector<4x8x8xf32>
    %13 = tpu.matmul %4, %7, %cst {dimension_numbers = #tpu.dot_dimension_numbers<[2], [2], [1], [1], [0, 0, 0, 1, 1, 1], [0], [0]>} : vector<4x8x8xbf16>, vector<4x8x8xbf16>, vector<4x8x8xf32> -> vector<4x8x8xf32>
    "tpu.trace_stop"() : () -> ()
    %14 = vector.shape_cast %12 : vector<1x8xf32> to vector<1x1x8xf32>
    %15 = vector.broadcast %14 : vector<1x1x8xf32> to vector<4x8x8xf32>
    %16 = arith.addf %13, %15 : vector<4x8x8xf32>
    %cst_7 = arith.constant dense<0xFF800000> : vector<4x8xf32>
    %17 = vector.multi_reduction <maximumf>, %16, %cst_7 [2] : vector<4x8x8xf32> to vector<4x8xf32>
    %18 = vector.shape_cast %17 : vector<4x8xf32> to vector<4x8x1xf32>
    %19 = vector.broadcast %18 : vector<4x8x1xf32> to vector<4x8x8xf32>
    %20 = arith.subf %16, %19 : vector<4x8x8xf32>
    %21 = math.exp %20 : vector<4x8x8xf32>
    %cst_8 = arith.constant dense<0.000000e+00> : vector<4x8xf32>
    %22 = vector.multi_reduction <add>, %21, %cst_8 [2] : vector<4x8x8xf32> to vector<4x8xf32>
    %23 = vector.shape_cast %22 : vector<4x8xf32> to vector<4x8x1xf32>
    %24 = tpu.reciprocal %23 {approx = true} : vector<4x8x1xf32> -> vector<4x8x1xf32>
    %25 = arith.truncf %21 : vector<4x8x8xf32> to vector<4x8x8xbf16>
    "tpu.trace_start"() <{level = 10 : i32, message = "hqk,hkd->hqd"}> : () -> ()
    %cst_9 = arith.constant dense<0.000000e+00> : vector<4x8x8xf32>
    %26 = tpu.matmul %25, %10, %cst_9 {dimension_numbers = #tpu.dot_dimension_numbers<[2], [1], [1], [2], [0, 0, 0, 1, 1, 2], [0], [0]>} : vector<4x8x8xbf16>, vector<4x8x8xbf16>, vector<4x8x8xf32> -> vector<4x8x8xf32>
    "tpu.trace_stop"() : () -> ()
    %27 = vector.broadcast %24 : vector<4x8x1xf32> to vector<4x8x8xf32>
    %28 = arith.mulf %26, %27 : vector<4x8x8xf32>
    %29 = vector.extract_strided_slice %28 {offsets = [0, 0, 0], sizes = [1, 8, 8], strides = [1, 1, 1]} : vector<4x8x8xf32> to vector<1x8x8xf32>
    %30 = vector.shape_cast %29 : vector<1x8x8xf32> to vector<8x8xf32>
    %31 = arith.truncf %30 : vector<8x8xf32> to vector<8x8xbf16>
    %c0_10 = arith.constant 0 : index
    %c0_11 = arith.constant 0 : index
    %c0_12 = arith.constant 0 : index
    %32 = vector.load %arg3[%c0_10, %c0_11, %c0_12] : memref<1x8x32xbf16, #tpu.memory_space<vmem>>, vector<1x8x8xbf16>
    %33 = vector.shape_cast %32 : vector<1x8x8xbf16> to vector<8x8xbf16>
    %34 = vector.shape_cast %31 : vector<8x8xbf16> to vector<1x8x8xbf16>
    tpu.vector_store %arg3[%c0_10, %c0_11, %c0_12], %34 {strides = array<i32>} : memref<1x8x32xbf16, #tpu.memory_space<vmem>>, vector<1x8x8xbf16>,
    %35 = vector.extract_strided_slice %28 {offsets = [1, 0, 0], sizes = [1, 8, 8], strides = [1, 1, 1]} : vector<4x8x8xf32> to vector<1x8x8xf32>
    %36 = vector.shape_cast %35 : vector<1x8x8xf32> to vector<8x8xf32>
    %37 = arith.truncf %36 : vector<8x8xf32> to vector<8x8xbf16>
    %c0_13 = arith.constant 0 : index
    %c0_14 = arith.constant 0 : index
    %c8 = arith.constant 8 : index
    %38 = vector.load %arg3[%c0_13, %c0_14, %c8] : memref<1x8x32xbf16, #tpu.memory_space<vmem>>, vector<1x8x8xbf16>
    %39 = vector.shape_cast %38 : vector<1x8x8xbf16> to vector<8x8xbf16>
    %40 = vector.shape_cast %37 : vector<8x8xbf16> to vector<1x8x8xbf16>
    tpu.vector_store %arg3[%c0_13, %c0_14, %c8], %40 {strides = array<i32>} : memref<1x8x32xbf16, #tpu.memory_space<vmem>>, vector<1x8x8xbf16>,
    %41 = vector.extract_strided_slice %28 {offsets = [2, 0, 0], sizes = [1, 8, 8], strides = [1, 1, 1]} : vector<4x8x8xf32> to vector<1x8x8xf32>
    %42 = vector.shape_cast %41 : vector<1x8x8xf32> to vector<8x8xf32>
    %43 = arith.truncf %42 : vector<8x8xf32> to vector<8x8xbf16>
    %c0_15 = arith.constant 0 : index
    %c0_16 = arith.constant 0 : index
    %c16 = arith.constant 16 : index
    %44 = vector.load %arg3[%c0_15, %c0_16, %c16] : memref<1x8x32xbf16, #tpu.memory_space<vmem>>, vector<1x8x8xbf16>
    %45 = vector.shape_cast %44 : vector<1x8x8xbf16> to vector<8x8xbf16>
    %46 = vector.shape_cast %43 : vector<8x8xbf16> to vector<1x8x8xbf16>
    tpu.vector_store %arg3[%c0_15, %c0_16, %c16], %46 {strides = array<i32>} : memref<1x8x32xbf16, #tpu.memory_space<vmem>>, vector<1x8x8xbf16>,
    %47 = vector.extract_strided_slice %28 {offsets = [3, 0, 0], sizes = [1, 8, 8], strides = [1, 1, 1]} : vector<4x8x8xf32> to vector<1x8x8xf32>
    %48 = vector.shape_cast %47 : vector<1x8x8xf32> to vector<8x8xf32>
    %49 = arith.truncf %48 : vector<8x8xf32> to vector<8x8xbf16>
    %c0_17 = arith.constant 0 : index
    %c0_18 = arith.constant 0 : index
    %c24 = arith.constant 24 : index
    %50 = vector.load %arg3[%c0_17, %c0_18, %c24] : memref<1x8x32xbf16, #tpu.memory_space<vmem>>, vector<1x8x8xbf16>
    %51 = vector.shape_cast %50 : vector<1x8x8xbf16> to vector<8x8xbf16>
    %52 = vector.shape_cast %49 : vector<8x8xbf16> to vector<1x8x8xbf16>
    tpu.vector_store %arg3[%c0_17, %c0_18, %c24], %52 {strides = array<i32>} : memref<1x8x32xbf16, #tpu.memory_space<vmem>>, vector<1x8x8xbf16>,
    return
  }
  func.func @transform_0(%arg0: i32) -> (i32, i32, i32, i32, i32) {
    %c0_i32 = arith.constant 0 : i32
    %c0_i32_0 = arith.constant 0 : i32
    %c0_i32_1 = arith.constant 0 : i32
    %c0_i32_2 = arith.constant 0 : i32
    %c0_i32_3 = arith.constant 0 : i32
    return %arg0, %c0_i32, %c0_i32_0, %c0_i32_1, %c0_i32_2 : i32, i32, i32, i32, i32
  }
  func.func @transform_1(%arg0: i32) -> (i32, i32, i32) {
    %c0_i32 = arith.constant 0 : i32
    %c0_i32_0 = arith.constant 0 : i32
    %c0_i32_1 = arith.constant 0 : i32
    return %arg0, %c0_i32, %c0_i32_0 : i32, i32, i32
  }
  func.func @transform_2(%arg0: i32) -> (i32, i32, i32) {
    %c0_i32 = arith.constant 0 : i32
    %c0_i32_0 = arith.constant 0 : i32
    %c0_i32_1 = arith.constant 0 : i32
    return %arg0, %c0_i32, %c0_i32_0 : i32, i32, i32
  }
}

module attributes {stable_mosaic.version = 11 : i64} {
  func.func @_matmul_res_ln_kernel(%arg0: i32, %arg1: i32, %arg2: memref<16x32xbf16, #tpu.memory_space<vmem>>, %arg3: memref<32x32xbf16, #tpu.memory_space<vmem>>, %arg4: memref<1x32xf32, #tpu.memory_space<vmem>>, %arg5: memref<16x32xf32, #tpu.memory_space<vmem>>, %arg6: memref<1x32xf32, #tpu.memory_space<vmem>>, %arg7: memref<1x32xf32, #tpu.memory_space<vmem>>, %arg8: memref<16x32xf32, #tpu.memory_space<vmem>>, %arg9: memref<16x32xf32, #tpu.memory_space<vmem>>) attributes {dimension_semantics = [#tpu.dimension_semantics<parallel>, #tpu.dimension_semantics<arbitrary>], iteration_bounds = array<i64: 1, 1>, scalar_prefetch = 0 : i64, scratch_operands = 1 : i64, tpu.core_type = #tpu.core_type<tc>, window_params = [{transform_indices = @transform_0, window_bounds = array<i64: 16, 32>}, {transform_indices = @transform_1, window_bounds = array<i64: 32, 32>}, {pipeline_mode = #tpu.pipeline_mode<synchronous>, transform_indices = @transform_2, window_bounds = array<i64: 1, 32>}, {transform_indices = @transform_3, window_bounds = array<i64: 16, 32>}, {pipeline_mode = #tpu.pipeline_mode<synchronous>, transform_indices = @transform_4, window_bounds = array<i64: 1, 32>}, {pipeline_mode = #tpu.pipeline_mode<synchronous>, transform_indices = @transform_5, window_bounds = array<i64: 1, 32>}, {transform_indices = @transform_6, window_bounds = array<i64: 16, 32>}]} {
    %c0_i32 = arith.constant 0 : i32
    %0 = arith.cmpi eq, %arg1, %c0_i32 : i32
    %1 = arith.extui %0 : i1 to i32
    %c0_i32_0 = arith.constant 0 : i32
    %2 = arith.cmpi ne, %1, %c0_i32_0 : i32
    scf.if %2 {
      %cst_10 = arith.constant 0.000000e+00 : f32
      %12 = vector.broadcast %cst_10 : f32 to vector<16x32xf32>
      %c0_11 = arith.constant 0 : index
      %c0_12 = arith.constant 0 : index
      %13 = vector.load %arg9[%c0_11, %c0_12] : memref<16x32xf32, #tpu.memory_space<vmem>>, vector<16x32xf32>
      tpu.vector_store %arg9[%c0_11, %c0_12], %12 {strides = array<i32>} : memref<16x32xf32, #tpu.memory_space<vmem>>, vector<16x32xf32>,
    } else {
    }
    %c0 = arith.constant 0 : index
    %c0_1 = arith.constant 0 : index
    %3 = vector.load %arg9[%c0, %c0_1] : memref<16x32xf32, #tpu.memory_space<vmem>>, vector<16x32xf32>
    %c0_2 = arith.constant 0 : index
    %c0_3 = arith.constant 0 : index
    %4 = vector.load %arg2[%c0_2, %c0_3] : memref<16x32xbf16, #tpu.memory_space<vmem>>, vector<16x32xbf16>
    %c0_4 = arith.constant 0 : index
    %c0_5 = arith.constant 0 : index
    %5 = vector.load %arg3[%c0_4, %c0_5] : memref<32x32xbf16, #tpu.memory_space<vmem>>, vector<32x32xbf16>
    %cst = arith.constant dense<0.000000e+00> : vector<16x32xf32>
    %6 = tpu.matmul %4, %5, %cst {dimension_numbers = #tpu.dot_dimension_numbers<[1], [0], [0], [1], [0, 0, 1, 1], [], []>} : vector<16x32xbf16>, vector<32x32xbf16>, vector<16x32xf32> -> vector<16x32xf32>
    %7 = arith.addf %3, %6 : vector<16x32xf32>
    %c0_6 = arith.constant 0 : index
    %c0_7 = arith.constant 0 : index
    %8 = vector.load %arg9[%c0_6, %c0_7] : memref<16x32xf32, #tpu.memory_space<vmem>>, vector<16x32xf32>
    tpu.vector_store %arg9[%c0_6, %c0_7], %7 {strides = array<i32>} : memref<16x32xf32, #tpu.memory_space<vmem>>, vector<16x32xf32>,
    %c0_i32_8 = arith.constant 0 : i32
    %9 = arith.cmpi eq, %arg1, %c0_i32_8 : i32
    %10 = arith.extui %9 : i1 to i32
    %c0_i32_9 = arith.constant 0 : i32
    %11 = arith.cmpi ne, %10, %c0_i32_9 : i32
    scf.if %11 {
      %c0_10 = arith.constant 0 : index
      %c0_11 = arith.constant 0 : index
      %12 = vector.load %arg9[%c0_10, %c0_11] : memref<16x32xf32, #tpu.memory_space<vmem>>, vector<16x32xf32>
      %c0_12 = arith.constant 0 : index
      %c0_13 = arith.constant 0 : index
      %13 = vector.load %arg4[%c0_12, %c0_13] : memref<1x32xf32, #tpu.memory_space<vmem>>, vector<1x32xf32>
      %14 = vector.broadcast %13 : vector<1x32xf32> to vector<16x32xf32>
      %15 = arith.addf %12, %14 : vector<16x32xf32>
      %c0_14 = arith.constant 0 : index
      %c0_15 = arith.constant 0 : index
      %16 = vector.load %arg5[%c0_14, %c0_15] : memref<16x32xf32, #tpu.memory_space<vmem>>, vector<16x32xf32>
      %17 = arith.addf %15, %16 : vector<16x32xf32>
      %cst_16 = arith.constant dense<0.000000e+00> : vector<16xf32>
      %18 = vector.multi_reduction <add>, %17, %cst_16 [1] : vector<16x32xf32> to vector<16xf32>
      %19 = vector.shape_cast %18 : vector<16xf32> to vector<16x1xf32>
      %cst_17 = arith.constant 3.200000e+01 : f32
      %20 = vector.broadcast %cst_17 : f32 to vector<16x1xf32>
      %21 = arith.divf %19, %20 : vector<16x1xf32>
      %22 = vector.broadcast %21 : vector<16x1xf32> to vector<16x32xf32>
      %23 = arith.subf %17, %22 : vector<16x32xf32>
      %24 = arith.mulf %23, %23 : vector<16x32xf32>
      %cst_18 = arith.constant dense<0.000000e+00> : vector<16xf32>
      %25 = vector.multi_reduction <add>, %24, %cst_18 [1] : vector<16x32xf32> to vector<16xf32>
      %26 = vector.shape_cast %25 : vector<16xf32> to vector<16x1xf32>
      %cst_19 = arith.constant 3.200000e+01 : f32
      %27 = vector.broadcast %cst_19 : f32 to vector<16x1xf32>
      %28 = arith.divf %26, %27 : vector<16x1xf32>
      %cst_20 = arith.constant 9.99999974E-6 : f32
      %29 = vector.broadcast %cst_20 : f32 to vector<16x1xf32>
      %30 = arith.addf %28, %29 : vector<16x1xf32>
      %31 = math.rsqrt %30 : vector<16x1xf32>
      %32 = vector.broadcast %31 : vector<16x1xf32> to vector<16x32xf32>
      %33 = arith.mulf %23, %32 : vector<16x32xf32>
      %c0_21 = arith.constant 0 : index
      %c0_22 = arith.constant 0 : index
      %34 = vector.load %arg6[%c0_21, %c0_22] : memref<1x32xf32, #tpu.memory_space<vmem>>, vector<1x32xf32>
      %35 = vector.broadcast %34 : vector<1x32xf32> to vector<16x32xf32>
      %36 = arith.mulf %33, %35 : vector<16x32xf32>
      %c0_23 = arith.constant 0 : index
      %c0_24 = arith.constant 0 : index
      %37 = vector.load %arg7[%c0_23, %c0_24] : memref<1x32xf32, #tpu.memory_space<vmem>>, vector<1x32xf32>
      %38 = vector.broadcast %37 : vector<1x32xf32> to vector<16x32xf32>
      %39 = arith.addf %36, %38 : vector<16x32xf32>
      %c0_25 = arith.constant 0 : index
      %c0_26 = arith.constant 0 : index
      %40 = vector.load %arg8[%c0_25, %c0_26] : memref<16x32xf32, #tpu.memory_space<vmem>>, vector<16x32xf32>
      tpu.vector_store %arg8[%c0_25, %c0_26], %39 {strides = array<i32>} : memref<16x32xf32, #tpu.memory_space<vmem>>, vector<16x32xf32>,
    } else {
    }
    return
  }
  func.func @transform_0(%arg0: i32, %arg1: i32) -> (i32, i32) {
    %c0_i32 = arith.constant 0 : i32
    return %arg0, %arg1 : i32, i32
  }
  func.func @transform_1(%arg0: i32, %arg1: i32) -> (i32, i32) {
    %c0_i32 = arith.constant 0 : i32
    %c0_i32_0 = arith.constant 0 : i32
    return %arg1, %c0_i32 : i32, i32
  }
  func.func @transform_2(%arg0: i32, %arg1: i32) -> (i32, i32) {
    %c0_i32 = arith.constant 0 : i32
    %c0_i32_0 = arith.constant 0 : i32
    %c0_i32_1 = arith.constant 0 : i32
    return %c0_i32, %c0_i32_0 : i32, i32
  }
  func.func @transform_3(%arg0: i32, %arg1: i32) -> (i32, i32) {
    %c0_i32 = arith.constant 0 : i32
    %c0_i32_0 = arith.constant 0 : i32
    return %arg0, %c0_i32 : i32, i32
  }
  func.func @transform_4(%arg0: i32, %arg1: i32) -> (i32, i32) {
    %c0_i32 = arith.constant 0 : i32
    %c0_i32_0 = arith.constant 0 : i32
    %c0_i32_1 = arith.constant 0 : i32
    return %c0_i32, %c0_i32_0 : i32, i32
  }
  func.func @transform_5(%arg0: i32, %arg1: i32) -> (i32, i32) {
    %c0_i32 = arith.constant 0 : i32
    %c0_i32_0 = arith.constant 0 : i32
    %c0_i32_1 = arith.constant 0 : i32
    return %c0_i32, %c0_i32_0 : i32, i32
  }
  func.func @transform_6(%arg0: i32, %arg1: i32) -> (i32, i32) {
    %c0_i32 = arith.constant 0 : i32
    %c0_i32_0 = arith.constant 0 : i32
    return %arg0, %c0_i32 : i32, i32
  }
}

module attributes {stable_mosaic.version = 11 : i64} {
  func.func @_matmul_kernel(%arg0: i32, %arg1: i32, %arg2: i32, %arg3: memref<16x32xf32, #tpu.memory_space<vmem>>, %arg4: memref<32x64xbf16, #tpu.memory_space<vmem>>, %arg5: memref<1x64xf32, #tpu.memory_space<vmem>>, %arg6: memref<16x64xbf16, #tpu.memory_space<vmem>>, %arg7: memref<16x64xf32, #tpu.memory_space<vmem>>) attributes {dimension_semantics = [#tpu.dimension_semantics<parallel>, #tpu.dimension_semantics<parallel>, #tpu.dimension_semantics<arbitrary>], iteration_bounds = array<i64: 1, 1, 1>, scalar_prefetch = 0 : i64, scratch_operands = 1 : i64, tpu.core_type = #tpu.core_type<tc>, window_params = [{transform_indices = @transform_0, window_bounds = array<i64: 16, 32>}, {transform_indices = @transform_1, window_bounds = array<i64: 32, 64>}, {transform_indices = @transform_2, window_bounds = array<i64: 1, 64>}, {transform_indices = @transform_3, window_bounds = array<i64: 16, 64>}]} {
    %c0_i32 = arith.constant 0 : i32
    %0 = arith.cmpi eq, %arg2, %c0_i32 : i32
    %1 = arith.extui %0 : i1 to i32
    %c0_i32_0 = arith.constant 0 : i32
    %2 = arith.cmpi ne, %1, %c0_i32_0 : i32
    scf.if %2 {
      %cst_10 = arith.constant 0.000000e+00 : f32
      %13 = vector.broadcast %cst_10 : f32 to vector<16x64xf32>
      %c0_11 = arith.constant 0 : index
      %c0_12 = arith.constant 0 : index
      %14 = vector.load %arg7[%c0_11, %c0_12] : memref<16x64xf32, #tpu.memory_space<vmem>>, vector<16x64xf32>
      tpu.vector_store %arg7[%c0_11, %c0_12], %13 {strides = array<i32>} : memref<16x64xf32, #tpu.memory_space<vmem>>, vector<16x64xf32>,
    } else {
    }
    %c0 = arith.constant 0 : index
    %c0_1 = arith.constant 0 : index
    %3 = vector.load %arg7[%c0, %c0_1] : memref<16x64xf32, #tpu.memory_space<vmem>>, vector<16x64xf32>
    %c0_2 = arith.constant 0 : index
    %c0_3 = arith.constant 0 : index
    %4 = vector.load %arg3[%c0_2, %c0_3] : memref<16x32xf32, #tpu.memory_space<vmem>>, vector<16x32xf32>
    %5 = arith.truncf %4 : vector<16x32xf32> to vector<16x32xbf16>
    %c0_4 = arith.constant 0 : index
    %c0_5 = arith.constant 0 : index
    %6 = vector.load %arg4[%c0_4, %c0_5] : memref<32x64xbf16, #tpu.memory_space<vmem>>, vector<32x64xbf16>
    %cst = arith.constant dense<0.000000e+00> : vector<16x64xf32>
    %7 = tpu.matmul %5, %6, %cst {dimension_numbers = #tpu.dot_dimension_numbers<[1], [0], [0], [1], [0, 0, 1, 1], [], []>} : vector<16x32xbf16>, vector<32x64xbf16>, vector<16x64xf32> -> vector<16x64xf32>
    %8 = arith.addf %3, %7 : vector<16x64xf32>
    %c0_6 = arith.constant 0 : index
    %c0_7 = arith.constant 0 : index
    %9 = vector.load %arg7[%c0_6, %c0_7] : memref<16x64xf32, #tpu.memory_space<vmem>>, vector<16x64xf32>
    tpu.vector_store %arg7[%c0_6, %c0_7], %8 {strides = array<i32>} : memref<16x64xf32, #tpu.memory_space<vmem>>, vector<16x64xf32>,
    %c0_i32_8 = arith.constant 0 : i32
    %10 = arith.cmpi eq, %arg2, %c0_i32_8 : i32
    %11 = arith.extui %10 : i1 to i32
    %c0_i32_9 = arith.constant 0 : i32
    %12 = arith.cmpi ne, %11, %c0_i32_9 : i32
    scf.if %12 {
      %c0_10 = arith.constant 0 : index
      %c0_11 = arith.constant 0 : index
      %13 = vector.load %arg7[%c0_10, %c0_11] : memref<16x64xf32, #tpu.memory_space<vmem>>, vector<16x64xf32>
      %c0_12 = arith.constant 0 : index
      %c0_13 = arith.constant 0 : index
      %14 = vector.load %arg5[%c0_12, %c0_13] : memref<1x64xf32, #tpu.memory_space<vmem>>, vector<1x64xf32>
      %15 = vector.broadcast %14 : vector<1x64xf32> to vector<16x64xf32>
      %16 = arith.addf %13, %15 : vector<16x64xf32>
      %cst_14 = arith.constant 5.000000e-01 : f32
      %17 = vector.broadcast %cst_14 : f32 to vector<16x64xf32>
      %18 = arith.mulf %17, %16 : vector<16x64xf32>
      %cst_15 = arith.constant 0.707106769 : f32
      %19 = vector.broadcast %cst_15 : f32 to vector<16x64xf32>
      %20 = arith.mulf %16, %19 : vector<16x64xf32>
      %21 = math.erf %20 : vector<16x64xf32>
      %cst_16 = arith.constant 1.000000e+00 : f32
      %22 = vector.broadcast %cst_16 : f32 to vector<16x64xf32>
      %23 = arith.addf %22, %21 : vector<16x64xf32>
      %24 = arith.mulf %18, %23 : vector<16x64xf32>
      %25 = arith.truncf %24 : vector<16x64xf32> to vector<16x64xbf16>
      %c0_17 = arith.constant 0 : index
      %c0_18 = arith.constant 0 : index
      %26 = vector.load %arg6[%c0_17, %c0_18] : memref<16x64xbf16, #tpu.memory_space<vmem>>, vector<16x64xbf16>
      tpu.vector_store %arg6[%c0_17, %c0_18], %25 {strides = array<i32>} : memref<16x64xbf16, #tpu.memory_space<vmem>>, vector<16x64xbf16>,
    } else {
    }
    return
  }
  func.func @transform_0(%arg0: i32, %arg1: i32, %arg2: i32) -> (i32, i32) {
    %c0_i32 = arith.constant 0 : i32
    return %arg0, %arg2 : i32, i32
  }
  func.func @transform_1(%arg0: i32, %arg1: i32, %arg2: i32) -> (i32, i32) {
    %c0_i32 = arith.constant 0 : i32
    return %arg2, %arg1 : i32, i32
  }
  func.func @transform_2(%arg0: i32, %arg1: i32, %arg2: i32) -> (i32, i32) {
    %c0_i32 = arith.constant 0 : i32
    %c0_i32_0 = arith.constant 0 : i32
    return %c0_i32, %arg1 : i32, i32
  }
  func.func @transform_3(%arg0: i32, %arg1: i32, %arg2: i32) -> (i32, i32) {
    %c0_i32 = arith.constant 0 : i32
    return %arg0, %arg1 : i32, i32
  }
}

module attributes {stable_mosaic.version = 11 : i64} {
  func.func @_matmul_res_ln_kernel(%arg0: i32, %arg1: i32, %arg2: memref<16x64xbf16, #tpu.memory_space<vmem>>, %arg3: memref<64x32xbf16, #tpu.memory_space<vmem>>, %arg4: memref<1x32xf32, #tpu.memory_space<vmem>>, %arg5: memref<16x32xf32, #tpu.memory_space<vmem>>, %arg6: memref<1x32xf32, #tpu.memory_space<vmem>>, %arg7: memref<1x32xf32, #tpu.memory_space<vmem>>, %arg8: memref<16x32xf32, #tpu.memory_space<vmem>>, %arg9: memref<16x32xf32, #tpu.memory_space<vmem>>) attributes {dimension_semantics = [#tpu.dimension_semantics<parallel>, #tpu.dimension_semantics<arbitrary>], iteration_bounds = array<i64: 1, 1>, scalar_prefetch = 0 : i64, scratch_operands = 1 : i64, tpu.core_type = #tpu.core_type<tc>, window_params = [{transform_indices = @transform_0, window_bounds = array<i64: 16, 64>}, {transform_indices = @transform_1, window_bounds = array<i64: 64, 32>}, {pipeline_mode = #tpu.pipeline_mode<synchronous>, transform_indices = @transform_2, window_bounds = array<i64: 1, 32>}, {transform_indices = @transform_3, window_bounds = array<i64: 16, 32>}, {pipeline_mode = #tpu.pipeline_mode<synchronous>, transform_indices = @transform_4, window_bounds = array<i64: 1, 32>}, {pipeline_mode = #tpu.pipeline_mode<synchronous>, transform_indices = @transform_5, window_bounds = array<i64: 1, 32>}, {transform_indices = @transform_6, window_bounds = array<i64: 16, 32>}]} {
    %c0_i32 = arith.constant 0 : i32
    %0 = arith.cmpi eq, %arg1, %c0_i32 : i32
    %1 = arith.extui %0 : i1 to i32
    %c0_i32_0 = arith.constant 0 : i32
    %2 = arith.cmpi ne, %1, %c0_i32_0 : i32
    scf.if %2 {
      %cst_10 = arith.constant 0.000000e+00 : f32
      %12 = vector.broadcast %cst_10 : f32 to vector<16x32xf32>
      %c0_11 = arith.constant 0 : index
      %c0_12 = arith.constant 0 : index
      %13 = vector.load %arg9[%c0_11, %c0_12] : memref<16x32xf32, #tpu.memory_space<vmem>>, vector<16x32xf32>
      tpu.vector_store %arg9[%c0_11, %c0_12], %12 {strides = array<i32>} : memref<16x32xf32, #tpu.memory_space<vmem>>, vector<16x32xf32>,
    } else {
    }
    %c0 = arith.constant 0 : index
    %c0_1 = arith.constant 0 : index
    %3 = vector.load %arg9[%c0, %c0_1] : memref<16x32xf32, #tpu.memory_space<vmem>>, vector<16x32xf32>
    %c0_2 = arith.constant 0 : index
    %c0_3 = arith.constant 0 : index
    %4 = vector.load %arg2[%c0_2, %c0_3] : memref<16x64xbf16, #tpu.memory_space<vmem>>, vector<16x64xbf16>
    %c0_4 = arith.constant 0 : index
    %c0_5 = arith.constant 0 : index
    %5 = vector.load %arg3[%c0_4, %c0_5] : memref<64x32xbf16, #tpu.memory_space<vmem>>, vector<64x32xbf16>
    %cst = arith.constant dense<0.000000e+00> : vector<16x32xf32>
    %6 = tpu.matmul %4, %5, %cst {dimension_numbers = #tpu.dot_dimension_numbers<[1], [0], [0], [1], [0, 0, 1, 1], [], []>} : vector<16x64xbf16>, vector<64x32xbf16>, vector<16x32xf32> -> vector<16x32xf32>
    %7 = arith.addf %3, %6 : vector<16x32xf32>
    %c0_6 = arith.constant 0 : index
    %c0_7 = arith.constant 0 : index
    %8 = vector.load %arg9[%c0_6, %c0_7] : memref<16x32xf32, #tpu.memory_space<vmem>>, vector<16x32xf32>
    tpu.vector_store %arg9[%c0_6, %c0_7], %7 {strides = array<i32>} : memref<16x32xf32, #tpu.memory_space<vmem>>, vector<16x32xf32>,
    %c0_i32_8 = arith.constant 0 : i32
    %9 = arith.cmpi eq, %arg1, %c0_i32_8 : i32
    %10 = arith.extui %9 : i1 to i32
    %c0_i32_9 = arith.constant 0 : i32
    %11 = arith.cmpi ne, %10, %c0_i32_9 : i32
    scf.if %11 {
      %c0_10 = arith.constant 0 : index
      %c0_11 = arith.constant 0 : index
      %12 = vector.load %arg9[%c0_10, %c0_11] : memref<16x32xf32, #tpu.memory_space<vmem>>, vector<16x32xf32>
      %c0_12 = arith.constant 0 : index
      %c0_13 = arith.constant 0 : index
      %13 = vector.load %arg4[%c0_12, %c0_13] : memref<1x32xf32, #tpu.memory_space<vmem>>, vector<1x32xf32>
      %14 = vector.broadcast %13 : vector<1x32xf32> to vector<16x32xf32>
      %15 = arith.addf %12, %14 : vector<16x32xf32>
      %c0_14 = arith.constant 0 : index
      %c0_15 = arith.constant 0 : index
      %16 = vector.load %arg5[%c0_14, %c0_15] : memref<16x32xf32, #tpu.memory_space<vmem>>, vector<16x32xf32>
      %17 = arith.addf %15, %16 : vector<16x32xf32>
      %cst_16 = arith.constant dense<0.000000e+00> : vector<16xf32>
      %18 = vector.multi_reduction <add>, %17, %cst_16 [1] : vector<16x32xf32> to vector<16xf32>
      %19 = vector.shape_cast %18 : vector<16xf32> to vector<16x1xf32>
      %cst_17 = arith.constant 3.200000e+01 : f32
      %20 = vector.broadcast %cst_17 : f32 to vector<16x1xf32>
      %21 = arith.divf %19, %20 : vector<16x1xf32>
      %22 = vector.broadcast %21 : vector<16x1xf32> to vector<16x32xf32>
      %23 = arith.subf %17, %22 : vector<16x32xf32>
      %24 = arith.mulf %23, %23 : vector<16x32xf32>
      %cst_18 = arith.constant dense<0.000000e+00> : vector<16xf32>
      %25 = vector.multi_reduction <add>, %24, %cst_18 [1] : vector<16x32xf32> to vector<16xf32>
      %26 = vector.shape_cast %25 : vector<16xf32> to vector<16x1xf32>
      %cst_19 = arith.constant 3.200000e+01 : f32
      %27 = vector.broadcast %cst_19 : f32 to vector<16x1xf32>
      %28 = arith.divf %26, %27 : vector<16x1xf32>
      %cst_20 = arith.constant 9.99999974E-6 : f32
      %29 = vector.broadcast %cst_20 : f32 to vector<16x1xf32>
      %30 = arith.addf %28, %29 : vector<16x1xf32>
      %31 = math.rsqrt %30 : vector<16x1xf32>
      %32 = vector.broadcast %31 : vector<16x1xf32> to vector<16x32xf32>
      %33 = arith.mulf %23, %32 : vector<16x32xf32>
      %c0_21 = arith.constant 0 : index
      %c0_22 = arith.constant 0 : index
      %34 = vector.load %arg6[%c0_21, %c0_22] : memref<1x32xf32, #tpu.memory_space<vmem>>, vector<1x32xf32>
      %35 = vector.broadcast %34 : vector<1x32xf32> to vector<16x32xf32>
      %36 = arith.mulf %33, %35 : vector<16x32xf32>
      %c0_23 = arith.constant 0 : index
      %c0_24 = arith.constant 0 : index
      %37 = vector.load %arg7[%c0_23, %c0_24] : memref<1x32xf32, #tpu.memory_space<vmem>>, vector<1x32xf32>
      %38 = vector.broadcast %37 : vector<1x32xf32> to vector<16x32xf32>
      %39 = arith.addf %36, %38 : vector<16x32xf32>
      %c0_25 = arith.constant 0 : index
      %c0_26 = arith.constant 0 : index
      %40 = vector.load %arg8[%c0_25, %c0_26] : memref<16x32xf32, #tpu.memory_space<vmem>>, vector<16x32xf32>
      tpu.vector_store %arg8[%c0_25, %c0_26], %39 {strides = array<i32>} : memref<16x32xf32, #tpu.memory_space<vmem>>, vector<16x32xf32>,
    } else {
    }
    return
  }
  func.func @transform_0(%arg0: i32, %arg1: i32) -> (i32, i32) {
    %c0_i32 = arith.constant 0 : i32
    return %arg0, %arg1 : i32, i32
  }
  func.func @transform_1(%arg0: i32, %arg1: i32) -> (i32, i32) {
    %c0_i32 = arith.constant 0 : i32
    %c0_i32_0 = arith.constant 0 : i32
    return %arg1, %c0_i32 : i32, i32
  }
  func.func @transform_2(%arg0: i32, %arg1: i32) -> (i32, i32) {
    %c0_i32 = arith.constant 0 : i32
    %c0_i32_0 = arith.constant 0 : i32
    %c0_i32_1 = arith.constant 0 : i32
    return %c0_i32, %c0_i32_0 : i32, i32
  }
  func.func @transform_3(%arg0: i32, %arg1: i32) -> (i32, i32) {
    %c0_i32 = arith.constant 0 : i32
    %c0_i32_0 = arith.constant 0 : i32
    return %arg0, %c0_i32 : i32, i32
  }
  func.func @transform_4(%arg0: i32, %arg1: i32) -> (i32, i32) {
    %c0_i32 = arith.constant 0 : i32
    %c0_i32_0 = arith.constant 0 : i32
    %c0_i32_1 = arith.constant 0 : i32
    return %c0_i32, %c0_i32_0 : i32, i32
  }
  func.func @transform_5(%arg0: i32, %arg1: i32) -> (i32, i32) {
    %c0_i32 = arith.constant 0 : i32
    %c0_i32_0 = arith.constant 0 : i32
    %c0_i32_1 = arith.constant 0 : i32
    return %c0_i32, %c0_i32_0 : i32, i32
  }
  func.func @transform_6(%arg0: i32, %arg1: i32) -> (i32, i32) {
    %c0_i32 = arith.constant 0 : i32
    %c0_i32_0 = arith.constant 0 : i32
    return %arg0, %c0_i32 : i32, i32
  }
}

module attributes {stable_mosaic.version = 11 : i64} {
  func.func @_matmul_res_ln_kernel(%arg0: i32, %arg1: i32, %arg2: memref<16x64xbf16, #tpu.memory_space<vmem>>, %arg3: memref<64x32xbf16, #tpu.memory_space<vmem>>, %arg4: memref<1x32xf32, #tpu.memory_space<vmem>>, %arg5: memref<16x32xf32, #tpu.memory_space<vmem>>, %arg6: memref<1x32xf32, #tpu.memory_space<vmem>>, %arg7: memref<1x32xf32, #tpu.memory_space<vmem>>, %arg8: memref<16x32xf32, #tpu.memory_space<vmem>>, %arg9: memref<16x32xf32, #tpu.memory_space<vmem>>) attributes {dimension_semantics = [#tpu.dimension_semantics<parallel>, #tpu.dimension_semantics<arbitrary>], iteration_bounds = array<i64: 1, 1>, scalar_prefetch = 0 : i64, scratch_operands = 1 : i64, tpu.core_type = #tpu.core_type<tc>, window_params = [{transform_indices = @transform_0, window_bounds = array<i64: 16, 64>}, {transform_indices = @transform_1, window_bounds = array<i64: 64, 32>}, {pipeline_mode = #tpu.pipeline_mode<synchronous>, transform_indices = @transform_2, window_bounds = array<i64: 1, 32>}, {transform_indices = @transform_3, window_bounds = array<i64: 16, 32>}, {pipeline_mode = #tpu.pipeline_mode<synchronous>, transform_indices = @transform_4, window_bounds = array<i64: 1, 32>}, {pipeline_mode = #tpu.pipeline_mode<synchronous>, transform_indices = @transform_5, window_bounds = array<i64: 1, 32>}, {transform_indices = @transform_6, window_bounds = array<i64: 16, 32>}]} {
    %c0_i32 = arith.constant 0 : i32
    %0 = arith.cmpi eq, %arg1, %c0_i32 : i32
    %1 = arith.extui %0 : i1 to i32
    %c0_i32_0 = arith.constant 0 : i32
    %2 = arith.cmpi ne, %1, %c0_i32_0 : i32
    scf.if %2 {
      %cst_10 = arith.constant 0.000000e+00 : f32
      %12 = vector.broadcast %cst_10 : f32 to vector<16x32xf32>
      %c0_11 = arith.constant 0 : index
      %c0_12 = arith.constant 0 : index
      %13 = vector.load %arg9[%c0_11, %c0_12] : memref<16x32xf32, #tpu.memory_space<vmem>>, vector<16x32xf32>
      tpu.vector_store %arg9[%c0_11, %c0_12], %12 {strides = array<i32>} : memref<16x32xf32, #tpu.memory_space<vmem>>, vector<16x32xf32>,
    } else {
    }
    %c0 = arith.constant 0 : index
    %c0_1 = arith.constant 0 : index
    %3 = vector.load %arg9[%c0, %c0_1] : memref<16x32xf32, #tpu.memory_space<vmem>>, vector<16x32xf32>
    %c0_2 = arith.constant 0 : index
    %c0_3 = arith.constant 0 : index
    %4 = vector.load %arg2[%c0_2, %c0_3] : memref<16x64xbf16, #tpu.memory_space<vmem>>, vector<16x64xbf16>
    %c0_4 = arith.constant 0 : index
    %c0_5 = arith.constant 0 : index
    %5 = vector.load %arg3[%c0_4, %c0_5] : memref<64x32xbf16, #tpu.memory_space<vmem>>, vector<64x32xbf16>
    %cst = arith.constant dense<0.000000e+00> : vector<16x32xf32>
    %6 = tpu.matmul %4, %5, %cst {dimension_numbers = #tpu.dot_dimension_numbers<[1], [0], [0], [1], [0, 0, 1, 1], [], []>} : vector<16x64xbf16>, vector<64x32xbf16>, vector<16x32xf32> -> vector<16x32xf32>
    %7 = arith.addf %3, %6 : vector<16x32xf32>
    %c0_6 = arith.constant 0 : index
    %c0_7 = arith.constant 0 : index
    %8 = vector.load %arg9[%c0_6, %c0_7] : memref<16x32xf32, #tpu.memory_space<vmem>>, vector<16x32xf32>
    tpu.vector_store %arg9[%c0_6, %c0_7], %7 {strides = array<i32>} : memref<16x32xf32, #tpu.memory_space<vmem>>, vector<16x32xf32>,
    %c0_i32_8 = arith.constant 0 : i32
    %9 = arith.cmpi eq, %arg1, %c0_i32_8 : i32
    %10 = arith.extui %9 : i1 to i32
    %c0_i32_9 = arith.constant 0 : i32
    %11 = arith.cmpi ne, %10, %c0_i32_9 : i32
    scf.if %11 {
      %c0_10 = arith.constant 0 : index
      %c0_11 = arith.constant 0 : index
      %12 = vector.load %arg9[%c0_10, %c0_11] : memref<16x32xf32, #tpu.memory_space<vmem>>, vector<16x32xf32>
      %c0_12 = arith.constant 0 : index
      %c0_13 = arith.constant 0 : index
      %13 = vector.load %arg4[%c0_12, %c0_13] : memref<1x32xf32, #tpu.memory_space<vmem>>, vector<1x32xf32>
      %14 = vector.broadcast %13 : vector<1x32xf32> to vector<16x32xf32>
      %15 = arith.addf %12, %14 : vector<16x32xf32>
      %c0_14 = arith.constant 0 : index
      %c0_15 = arith.constant 0 : index
      %16 = vector.load %arg5[%c0_14, %c0_15] : memref<16x32xf32, #tpu.memory_space<vmem>>, vector<16x32xf32>
      %17 = arith.addf %15, %16 : vector<16x32xf32>
      %cst_16 = arith.constant dense<0.000000e+00> : vector<16xf32>
      %18 = vector.multi_reduction <add>, %17, %cst_16 [1] : vector<16x32xf32> to vector<16xf32>
      %19 = vector.shape_cast %18 : vector<16xf32> to vector<16x1xf32>
      %cst_17 = arith.constant 3.200000e+01 : f32
      %20 = vector.broadcast %cst_17 : f32 to vector<16x1xf32>
      %21 = arith.divf %19, %20 : vector<16x1xf32>
      %22 = vector.broadcast %21 : vector<16x1xf32> to vector<16x32xf32>
      %23 = arith.subf %17, %22 : vector<16x32xf32>
      %24 = arith.mulf %23, %23 : vector<16x32xf32>
      %cst_18 = arith.constant dense<0.000000e+00> : vector<16xf32>
      %25 = vector.multi_reduction <add>, %24, %cst_18 [1] : vector<16x32xf32> to vector<16xf32>
      %26 = vector.shape_cast %25 : vector<16xf32> to vector<16x1xf32>
      %cst_19 = arith.constant 3.200000e+01 : f32
      %27 = vector.broadcast %cst_19 : f32 to vector<16x1xf32>
      %28 = arith.divf %26, %27 : vector<16x1xf32>
      %cst_20 = arith.constant 9.99999974E-6 : f32
      %29 = vector.broadcast %cst_20 : f32 to vector<16x1xf32>
      %30 = arith.addf %28, %29 : vector<16x1xf32>
      %31 = math.rsqrt %30 : vector<16x1xf32>
      %32 = vector.broadcast %31 : vector<16x1xf32> to vector<16x32xf32>
      %33 = arith.mulf %23, %32 : vector<16x32xf32>
      %c0_21 = arith.constant 0 : index
      %c0_22 = arith.constant 0 : index
      %34 = vector.load %arg6[%c0_21, %c0_22] : memref<1x32xf32, #tpu.memory_space<vmem>>, vector<1x32xf32>
      %35 = vector.broadcast %34 : vector<1x32xf32> to vector<16x32xf32>
      %36 = arith.mulf %33, %35 : vector<16x32xf32>
      %c0_23 = arith.constant 0 : index
      %c0_24 = arith.constant 0 : index
      %37 = vector.load %arg7[%c0_23, %c0_24] : memref<1x32xf32, #tpu.memory_space<vmem>>, vector<1x32xf32>
      %38 = vector.broadcast %37 : vector<1x32xf32> to vector<16x32xf32>
      %39 = arith.addf %36, %38 : vector<16x32xf32>
      %c0_25 = arith.constant 0 : index
      %c0_26 = arith.constant 0 : index
      %40 = vector.load %arg8[%c0_25, %c0_26] : memref<16x32xf32, #tpu.memory_space<vmem>>, vector<16x32xf32>
      tpu.vector_store %arg8[%c0_25, %c0_26], %39 {strides = array<i32>} : memref<16x32xf32, #tpu.memory_space<vmem>>, vector<16x32xf32>,
    } else {
    }
    return
  }
  func.func @transform_0(%arg0: i32, %arg1: i32) -> (i32, i32) {
    %c0_i32 = arith.constant 0 : i32
    return %arg0, %arg1 : i32, i32
  }
  func.func @transform_1(%arg0: i32, %arg1: i32) -> (i32, i32) {
    %c0_i32 = arith.constant 0 : i32
    %c0_i32_0 = arith.constant 0 : i32
    return %arg1, %c0_i32 : i32, i32
  }
  func.func @transform_2(%arg0: i32, %arg1: i32) -> (i32, i32) {
    %c0_i32 = arith.constant 0 : i32
    %c0_i32_0 = arith.constant 0 : i32
    %c0_i32_1 = arith.constant 0 : i32
    return %c0_i32, %c0_i32_0 : i32, i32
  }
  func.func @transform_3(%arg0: i32, %arg1: i32) -> (i32, i32) {
    %c0_i32 = arith.constant 0 : i32
    %c0_i32_0 = arith.constant 0 : i32
    return %arg0, %c0_i32 : i32, i32
  }
  func.func @transform_4(%arg0: i32, %arg1: i32) -> (i32, i32) {
    %c0_i32 = arith.constant 0 : i32
    %c0_i32_0 = arith.constant 0 : i32
    %c0_i32_1 = arith.constant 0 : i32
    return %c0_i32, %c0_i32_0 : i32, i32
  }
  func.func @transform_5(%arg0: i32, %arg1: i32) -> (i32, i32) {
    %c0_i32 = arith.constant 0 : i32
    %c0_i32_0 = arith.constant 0 : i32
    %c0_i32_1 = arith.constant 0 : i32
    return %c0_i32, %c0_i32_0 : i32, i32
  }
  func.func @transform_6(%arg0: i32, %arg1: i32) -> (i32, i32) {
    %c0_i32 = arith.constant 0 : i32
    %c0_i32_0 = arith.constant 0 : i32
    return %arg0, %c0_i32 : i32, i32
  }
}

</mosaic_0001>

<bundles_post_ra>
// kernel: bart_pop_encoder.12
= control target key start
LH: loop header
LB: loop body
LE: loop exit
PB: predicated region body
PF: predicated region fallthrough
CT: control target
= control target key end

     0   :  { %vm19_vm0 = vcmask 785408   ;;  %v99_v1 = vmov 0.0   ;;  %vm43_vm1 = vcmask 261120   ;;  %vm79_vm2 = vcmask 781312   ;;  %s145_s1 = inlined_call_operand.vmem [shape: bf16[32,96], index: 1, kind: input, shape index: {}]   ;;  %s146_s0 = inlined_call_operand.vmem [shape: f32[16,32], index: 0, kind: input, shape index: {}]   ;;  %s147_s2 = inlined_call_operand.vmem [shape: f32[1,96], index: 2, kind: input, shape index: {}]   ;;  %s148_s3 = inlined_call_operand.vmem [shape: bf16[16,96], index: 3, kind: output, shape index: {}]  }
   0x1   :  { %v96_v0 = vld [vmem:[%s145_s1 + $0x8] sm:$0xff]  ;;  %20 = vst.msk [vmem:[#allocation2] sm:$0xff] %vm19_vm0, %v99_v1  ;;  %v95_v2 = vld [vmem:[%s145_s1] sm:$0xff] }
   0x2   :  { %21 = vst.msk [vmem:[#allocation2 + $0x8] sm:$0xff] %vm19_vm0, %v99_v1  ;;  %53 = vmatpush.bf16.msra.mxu0 %v96_v0  ;;  %v24_v3 = vld [vmem:[%s146_s0] sm:$0xff]  ;;  %v25_v4 = vld [vmem:[%s146_s0 + $0x8] sm:$0xff] }
   0x3   :  { %v26_v5 = vpack.c.bf16 %v25_v4, %v24_v3  ;;  %v98_v10 = vld [vmem:[%s147_s2] ss:$0 sm:$0xff] }
   0x6   :  { %54 = vmatpush.bf16.msra.mxu0 %v95_v2 }
   0x8   :  { %v22_v6 = vld [vmem:[#allocation2] sm:$0xff] }
   0x9   :  { %94 = vmatmul.msk.bf16.vlgmr.msra.gmra.mxu0 %vm43_vm1, %v26_v5  ;;  %v23_v9 = vld [vmem:[#allocation2 + $0x8] sm:$0xff] }
  0x86   :  { %v56_v7 = vpop.f32.mrf.mxu0 }
  0x87   :  { %v61_v8 = vadd.f32 %v56_v7, %v22_v6 }
  0x89   :  { %64 = vst.msk [vmem:[#allocation2] sm:$0xff] %vm19_vm0, %v61_v8 }
  0x8e   :  { %v58_v11 = vpop.f32.mrf.mxu0 }
  0x8f   :  { %v62_v12 = vadd.f32 %v58_v11, %v23_v9 }
  0x90   :  { %v69_v13 = vld [vmem:[#allocation2] sm:$0xff] }
  0x91   :  { %v75_v14 = vadd.f32 %v98_v10, %v69_v13  ;;  %65 = vst.msk [vmem:[#allocation2 + $0x8] sm:$0xff] %vm19_vm0, %v62_v12 }
  0x93   :  { %v77_v15 = vpack.c.bf16 %v75_v14, %v75_v14 }
  0x95   :  { %80 = vst.msk [vmem:[%s148_s3] sm:$0xf] %vm79_vm2, %v77_v15 }
  0x98   :  { %v70_v16 = vld [vmem:[#allocation2 + $0x8] sm:$0xff] }
  0x99   :  { %v76_v17 = vadd.f32 %v98_v10, %v70_v16 }
  0x9b   :  { %v78_v18 = vpack.c.bf16 %v76_v17, %v76_v17 }
  0x9d   :  { %81 = vst.msk [vmem:[%s148_s3 + $0x4] sm:$0xf] %vm79_vm2, %v78_v18 }

// kernel: bart_pop_encoder.11
= control target key start
LH: loop header
LB: loop body
LE: loop exit
PB: predicated region body
PF: predicated region fallthrough
CT: control target
= control target key end

     0   :  { %s466_s15 = smov 0   ;;  %s468_s16 = smov 0   ;;  %s518_s0 = inlined_call_operand.vmem [shape: f32[2,8,32], index: 0, kind: input, shape index: {}]   ;;  %s519_s1 = inlined_call_operand.vmem [shape: f32[8,32], index: 1, kind: input, shape index: {}]   ;;  %s520_s2 = inlined_call_operand.vmem [shape: f32[1,32], index: 2, kind: input, shape index: {}]   ;;  %s521_s3 = inlined_call_operand.vmem [shape: f32[1,32], index: 3, kind: input, shape index: {}]   ;;  %s522_s4 = inlined_call_operand.vmem [shape: f32[2,8,32], index: 4, kind: output, shape index: {}]  }
   0x1   :  { %s470_s17 = smov 0  }
   0x2 LB: > { %s26_s18 = sadd.s32 1, %s434_s16  ;;  %p380_p0 = scmp.ge.s32.totalorder %s438_s17, 1  ;;  %s438_s17 = sphi %s470_s17, %s14_s17   ;;  %s434_s16 = sphi %s468_s16, %s524_s16   ;;  %s430_s15 = sphi %s466_s15, %s523_s15  }
   0x3   : > { %p28_p1 = scmp.ge.s32.totalorder %s26_s18, 2  ;;  %p189_p2 = scmp.lt.s32.totalorder %s438_s17, 3 }
   0x5   : > { %s526_s18 = smov (%p28_p1, %s26_s18), 0  ;;  %p190_p3 = pnand %p380_p0, %p189_p2 }
   0x6   : > { %p223_p4 = scmp.lt.s32.totalorder (!%p190_p3), %s430_s15, 1 }
   0x7   : > { %193 = sbr.rel (%p190_p3) target bundleno = 287 (0x11f), region = 36 }
   0xc   : > { %s528_s15 = smov (!%p223_p4, %s430_s15), 1  ;;  %v242_v0 = vld [vmem:[%s519_s1] sm:$0xff]  ;;  %vm244_vm0 = vcmask 261120   ;;  %v440_v4 = vmov 32.0  }
   0xd   : > { %s381_s19 = sshll.u32 %s528_s15, 3  ;;  %412 = vrcp.f32 %v440_v4  ;;  %v410_v25 = vld [vmem:[%s520_s2] ss:$0 sm:$0xff] }
   0xe   : > { %s229_s24 = scalar_lea.vmem %s518_s0, %s381_s19  ;;  %v411_v27 = vld [vmem:[%s521_s3] ss:$0 sm:$0xff]  ;;  %s240_s5 = scalar_lea.vmem %s522_s4, %s381_s19 }
   0xf   : > { %v241_v1 = vld [vmem:[%s229_s24] sm:$0xff] }
  0x10   : > { %v243_v2 = vadd.f32 %v242_v0, %v241_v1 }
  0x12   : > { %v245_v3 = vsel %vm244_vm0, %v243_v2, 0.0 }
  0x13   : > { %246 = vadd.xlane.f32.xlu0 %v245_v3  ;;  %v413_v5 = vpop.eup %412 }
  0x14   : > { %v249_v6 = vmul.f32 32.0, %v413_v5  ;;  %vm253_vm1 = vweird.f32 %v413_v5 }
  0x16   : > { %v250_v7 = vsub.f32 1.0, %v249_v6 }
  0x18   : > { %v251_v8 = vmul.f32 %v413_v5, %v250_v7 }
  0x1a   : > { %v252_v9 = vadd.f32 %v413_v5, %v251_v8 }
  0x1c   : > { %v254_v10 = vsel %vm253_vm1, %v413_v5, %v252_v9 }
  0x86   : > { %v247_v11 = vpop.xlane.xlu0 %246 }
  0x87   : > { %v255_v12 = vmul.f32 %v254_v10, %v247_v11 }
  0x89   : > { %v256_v13 = vsub.f32 %v243_v2, %v255_v12 }
  0x8b   : > { %v257_v14 = vmul.f32 %v256_v13, %v256_v13 }
  0x8d   : > { %v258_v15 = vsel %vm244_vm0, %v257_v14, 0.0 }
  0x8e   : > { %259 = vadd.xlane.f32.xlu0 %v258_v15 }
 0x101   : > { %v260_v16 = vpop.xlane.xlu0 %259 }
 0x102   : > { %v261_v17 = vmul.f32 %v260_v16, %v254_v10 }
 0x104   : > { %v262_v18 = vadd.f32 1e-05, %v261_v17 }
 0x106   : > { %414 = vrsqrt.f32 %v262_v18  ;;  %vm269_vm3 = vweird.f32 %v262_v18 }
 0x10c   : > { %v415_v19 = vpop.eup %414 }
 0x10d   : > { %v264_v20 = vmul.f32 %v415_v19, %v262_v18  ;;  %vm270_vm2 = vweird.f32 %v415_v19 }
 0x10e   : > { %vm271_vm4 = vmor %vm269_vm3, %vm270_vm2 }
 0x10f   : > { %v265_v21 = vmul.f32 %v415_v19, %v264_v20 }
 0x111   : > { %v266_v22 = vmul.f32 0.5, %v265_v21 }
 0x113   : > { %v267_v23 = vsub.f32 1.5, %v266_v22 }
 0x115   : > { %v268_v24 = vmul.f32 %v415_v19, %v267_v23 }
 0x117   : > { %v272_v26 = vsel %vm271_vm4, %v415_v19, %v268_v24 }
 0x118   : > { %v273_v28 = vmul.f32 %v272_v26, %v256_v13 }
 0x11a   : > { %v278_v29 = vmul.f32 %v410_v25, %v273_v28 }
 0x11c   : > { %v283_v30 = vadd.f32 %v411_v27, %v278_v29 }
 0x11e   : > { %284 = vst.msk [vmem:[%s240_s5] sm:$0xff] %vm244_vm0, %v283_v30 }
 0x11f PF: > { %s14_s17 = sadd.s32 1, %s438_s17   ;;  %s523_s15 = smov %s434_s16 }
 0x120   : > { %p11_p5 = scmp.ge.s32.totalorder %s14_s17, 4   ;;  %s524_s16 = smov %s526_s18 }
 0x122   :  { %13 = sbr.rel (!%p11_p5) target bundleno = 2 (0x2), region = 69 }

// kernel: bart_pop_encoder.14
= control target key start
LH: loop header
LB: loop body
LE: loop exit
PB: predicated region body
PF: predicated region fallthrough
CT: control target
= control target key end

     0   :  { %vm28_vm0 = vcmask 261120   ;;  %v189_v1 = vmov 0.0   ;;  %v190_v21 = vmov 32.0   ;;  %s267_s1 = inlined_call_operand.vmem [shape: bf16[32,32], index: 1, kind: input, shape index: {}]   ;;  %s268_s0 = inlined_call_operand.vmem [shape: bf16[16,32], index: 0, kind: input, shape index: {}]   ;;  %s269_s2 = inlined_call_operand.vmem [shape: f32[1,32], index: 2, kind: input, shape index: {}]   ;;  %s270_s3 = inlined_call_operand.vmem [shape: f32[16,32], index: 3, kind: input, shape index: {}]   ;;  %s271_s4 = inlined_call_operand.vmem [shape: f32[1,32], index: 4, kind: input, shape index: {}]   ;;  %s272_s5 = inlined_call_operand.vmem [shape: f32[1,32], index: 5, kind: input, shape index: {}]   ;;  %s273_s6 = inlined_call_operand.vmem [shape: f32[16,32], index: 6, kind: output, shape index: {}]  }
   0x1   :  { %v177_v0 = vld [vmem:[%s267_s1 + $0x8] sm:$0xff]  ;;  %29 = vst.msk [vmem:[#allocation2] sm:$0xff] %vm28_vm0, %v189_v1  ;;  %v176_v2 = vld [vmem:[%s267_s1] sm:$0xff]  ;;  %183 = vrcp.f32 %v190_v21 }
   0x2   :  { %30 = vst.msk [vmem:[#allocation2 + $0x8] sm:$0xff] %vm28_vm0, %v189_v1  ;;  %66 = vmatpush.bf16.msra.mxu0 %v177_v0  ;;  %v175_v3 = vld [vmem:[%s268_s0] sm:$0xff]  ;;  %v90_v17 = vld [vmem:[%s270_s3 + $0x8] sm:$0xff] }
   0x3   :  { %v180_v8 = vld [vmem:[%s269_s2] ss:$0 sm:$0xff] }
   0x4   :  { %v89_v12 = vld [vmem:[%s270_s3] sm:$0xff] }
   0x5   :  { %v181_v52 = vld [vmem:[%s271_s4] ss:$0 sm:$0xff] }
   0x6   :  { %67 = vmatpush.bf16.msra.mxu0 %v176_v2  ;;  %v182_v55 = vld [vmem:[%s272_s5] ss:$0 sm:$0xff] }
   0x7   :  { %v184_v22 = vpop.eup %183 }
   0x8   :  { %v31_v4 = vld [vmem:[#allocation2] sm:$0xff]  ;;  %v100_v23 = vmul.f32 32.0, %v184_v22  ;;  %vm104_vm1 = vweird.f32 %v184_v22 }
   0x9   :  { %174 = vmatmul.msk.bf16.vlgmr.msra.gmra.mxu0 %vm28_vm0, %v175_v3  ;;  %v32_v7 = vld [vmem:[#allocation2 + $0x8] sm:$0xff] }
   0xa   :  { %v101_v24 = vsub.f32 1.0, %v100_v23 }
   0xc   :  { %v102_v25 = vmul.f32 %v184_v22, %v101_v24 }
   0xe   :  { %v103_v26 = vadd.f32 %v184_v22, %v102_v25 }
  0x10   :  { %v105_v27 = vsel %vm104_vm1, %v184_v22, %v103_v26 }
  0x86   :  { %v69_v5 = vpop.f32.mrf.mxu0 }
  0x87   :  { %v74_v6 = vadd.f32 %v69_v5, %v31_v4 }
  0x89   :  { %76 = vst.msk [vmem:[#allocation2] sm:$0xff] %vm28_vm0, %v74_v6 }
  0x8e   :  { %v71_v9 = vpop.f32.mrf.mxu0 }
  0x8f   :  { %v75_v10 = vadd.f32 %v71_v9, %v32_v7 }
  0x90   :  { %v81_v11 = vld [vmem:[#allocation2] sm:$0xff] }
  0x91   :  { %77 = vst.msk [vmem:[#allocation2 + $0x8] sm:$0xff] %vm28_vm0, %v75_v10  ;;  %v87_v13 = vadd.f32 %v180_v8, %v81_v11 }
  0x93   :  { %v91_v14 = vadd.f32 %v89_v12, %v87_v13 }
  0x95   :  { %v93_v15 = vsel %vm28_vm0, %v91_v14, 0.0 }
  0x96   :  { %94 = vadd.xlane.f32.xlu0 %v93_v15 }
  0x98   :  { %v82_v16 = vld [vmem:[#allocation2 + $0x8] sm:$0xff] }
  0x99   :  { %v88_v18 = vadd.f32 %v180_v8, %v82_v16 }
  0x9b   :  { %v92_v19 = vadd.f32 %v90_v17, %v88_v18 }
  0x9d   :  { %v96_v20 = vsel %vm28_vm0, %v92_v19, 0.0 }
  0x9e   :  { %97 = vadd.xlane.f32.xlu0 %v96_v20 }
 0x109   :  { %v95_v28 = vpop.xlane.xlu0 %94 }
 0x10a   :  { %v106_v29 = vmul.f32 %v105_v27, %v95_v28 }
 0x10c   :  { %v108_v30 = vsub.f32 %v91_v14, %v106_v29 }
 0x10e   :  { %v110_v31 = vmul.f32 %v108_v30, %v108_v30 }
 0x110   :  { %v112_v32 = vsel %vm28_vm0, %v110_v31, 0.0 }
 0x111   :  { %113 = vadd.xlane.f32.xlu1 %v112_v32  ;;  %v98_v33 = vpop.xlane.xlu0 %97 }
 0x112   :  { %v107_v34 = vmul.f32 %v105_v27, %v98_v33 }
 0x114   :  { %v109_v35 = vsub.f32 %v92_v19, %v107_v34 }
 0x116   :  { %v111_v36 = vmul.f32 %v109_v35, %v109_v35 }
 0x118   :  { %v115_v37 = vsel %vm28_vm0, %v111_v36, 0.0 }
 0x119   :  { %116 = vadd.xlane.f32.xlu1 %v115_v37 }
 0x184   :  { %v114_v38 = vpop.xlane.xlu1 %113 }
 0x185   :  { %v118_v39 = vmul.f32 %v114_v38, %v105_v27 }
 0x187   :  { %v120_v40 = vadd.f32 1e-05, %v118_v39 }
 0x189   :  { %185 = vrsqrt.f32 %v120_v40  ;;  %vm128_vm3 = vweird.f32 %v120_v40 }
 0x18c   :  { %v117_v41 = vpop.xlane.xlu1 %116 }
 0x18d   :  { %v119_v42 = vmul.f32 %v117_v41, %v105_v27 }
 0x18f   :  { %v186_v43 = vpop.eup %185  ;;  %v121_v44 = vadd.f32 1e-05, %v119_v42 }
 0x190   :  { %v123_v45 = vmul.f32 %v186_v43, %v120_v40  ;;  %vm129_vm2 = vweird.f32 %v186_v43 }
 0x191   :  { %187 = vrsqrt.f32 %v121_v44  ;;  %vm130_vm4 = vmor %vm128_vm3, %vm129_vm2  ;;  %vm138_vm6 = vweird.f32 %v121_v44 }
 0x192   :  { %v124_v46 = vmul.f32 %v186_v43, %v123_v45 }
 0x194   :  { %v125_v47 = vmul.f32 0.5, %v124_v46 }
 0x196   :  { %v126_v48 = vsub.f32 1.5, %v125_v47 }
 0x197   :  { %v188_v49 = vpop.eup %187 }
 0x198   :  { %v127_v50 = vmul.f32 %v186_v43, %v126_v48  ;;  %v133_v51 = vmul.f32 %v188_v49, %v121_v44  ;;  %vm139_vm5 = vweird.f32 %v188_v49 }
 0x199   :  { %vm140_vm7 = vmor %vm138_vm6, %vm139_vm5 }
 0x19a   :  { %v131_v53 = vsel %vm130_vm4, %v186_v43, %v127_v50  ;;  %v134_v54 = vmul.f32 %v188_v49, %v133_v51 }
 0x19b   :  { %v142_v56 = vmul.f32 %v131_v53, %v108_v30 }
 0x19c   :  { %v135_v57 = vmul.f32 0.5, %v134_v54 }
 0x19d   :  { %v148_v58 = vmul.f32 %v181_v52, %v142_v56 }
 0x19e   :  { %v136_v59 = vsub.f32 1.5, %v135_v57 }
 0x19f   :  { %v154_v60 = vadd.f32 %v182_v55, %v148_v58 }
 0x1a0   :  { %v137_v61 = vmul.f32 %v188_v49, %v136_v59 }
 0x1a1   :  { %156 = vst.msk [vmem:[%s273_s6] sm:$0xff] %vm28_vm0, %v154_v60 }
 0x1a2   :  { %v141_v62 = vsel %vm140_vm7, %v188_v49, %v137_v61 }
 0x1a3   :  { %v143_v63 = vmul.f32 %v141_v62, %v109_v35 }
 0x1a5   :  { %v149_v0 = vmul.f32 %v181_v52, %v143_v63 }
 0x1a7   :  { %v155_v1 = vadd.f32 %v182_v55, %v149_v0 }
 0x1a9   :  { %157 = vst.msk [vmem:[%s273_s6 + $0x8] sm:$0xff] %vm28_vm0, %v155_v1 }

// kernel: bart_pop_encoder.13
= control target key start
LH: loop header
LB: loop body
LE: loop exit
PB: predicated region body
PF: predicated region fallthrough
CT: control target
= control target key end

     0   :  { %s776_s9 = smov 0   ;;  %s951_s0 = inlined_call_operand.vmem [shape: bf16[2,8,3,4,8], index: 0, kind: input, shape index: {}]   ;;  %s952_s1 = inlined_call_operand.vmem [shape: f32[2,1,8], index: 1, kind: input, shape index: {}]   ;;  %s953_s2 = inlined_call_operand.vmem [shape: bf16[2,8,32], index: 2, kind: output, shape index: {}]  }
   0x1 LB: > { %s702_s10 = sadd.s32 4294967295, %s755_s9   ;;  %p706_p0 = scmp.ge.s32.totalorder %s755_s9, 1  ;;  %s755_s9 = sphi %s776_s9, %s12_s9  }
   0x2   : > { %p120_p1 = scmp.lt.s32.totalorder %s755_s9, 3 }
   0x4   : > { %p121_p2 = pnand %p706_p0, %p120_p1 }
   0x5   : > { %p144_p3 = scmp.lt.s32.totalorder (!%p121_p2), %s702_s10, 1  ;;  %s758_s20 = smov (!%p121_p2), 8  }
   0x6   : > { %124 = sbr.rel (%p121_p2) target bundleno = 622 (0x26e), region = 28  ;;  %s759_s25 = smov (!%p121_p2), 16  }
   0x7   : > { %s760_s26 = smov (!%p121_p2), 24  }
   0xb   : > { %s955_s10 = smov (!%p144_p3, %s702_s10), 1  ;;  %v757_v0 = vmov 1934713408   ;;  %vm182_vm0 = vcmask 1047556   ;;  %vm366_vm1 = vcmask 64512   ;;  %vm524_vm2 = vcmask 1043456  }
   0xc   : > { %s719_s11 = smul.u32 48, %s955_s10  ;;  %s151_s14 = scalar_lea.vmem %s952_s1, %s955_s10  ;;  %v185_v1 = vunpack.c.l.s4 %v757_v0  ;;  %vm617_vm3 = vcmask 60416   ;;  %vm624_vm4 = vcmask 126016   ;;  %vm631_vm5 = vcmask 191616  }
   0xd   : > { %s708_s21 = sshll.u32 %s955_s10, 2  ;;  %vm638_vm6 = vcmask 257216  }
   0xe   : > { %s794_s17 = scalar_lea.vmem %s951_s0, %s719_s11  ;;  %v807_v13 = vunpack.c.0.s8 %v185_v1  ;;  %s942_s24 = scalar_lea.vmem %s953_s2, %s708_s21 }
   0xf   : > { %v157_v2 = vld [vmem:[%s794_s17] sm:$0x3]  ;;  %v160_v3 = vld [vmem:[%s794_s17 + $0x6] sm:$0x3]  ;;  %v163_v4 = vld [vmem:[%s794_s17 + $0xc] sm:$0x3] }
  0x10   : > { %v164_v5 = vld [vmem:[%s794_s17 + $0xe] sm:$0x3]  ;;  %v166_v6 = vld [vmem:[%s794_s17 + $0x12] sm:$0x3]  ;;  %v167_v7 = vld [vmem:[%s794_s17 + $0x14] sm:$0x3] }
  0x11   : > { %v169_v8 = vld [vmem:[%s794_s17 + $0x18] sm:$0x3]  ;;  %v172_v9 = vld [vmem:[%s794_s17 + $0x1e] sm:$0x3]  ;;  %v175_v10 = vld [vmem:[%s794_s17 + $0x24] sm:$0x3] }
  0x12   : > { %v176_v11 = vld [vmem:[%s794_s17 + $0x26] sm:$0x3]  ;;  %v178_v12 = vld [vmem:[%s794_s17 + $0x2a] sm:$0x3]  ;;  %v179_v14 = vld [vmem:[%s794_s17 + $0x2c] sm:$0x3] }
  0x13   : > { %v181_v15 = vrot.slane %v163_v4, 4  ;;  %v190_v16 = vrot.slane %v166_v6, 4  ;;  %v198_v17 = vrot.slane %v175_v10, 4  ;;  %v206_v18 = vrot.slane %v178_v12, 4  ;;  %v158_v23 = vld [vmem:[%s794_s17 + $0x2] sm:$0x3] }
  0x14   : > { %v238_v19 = vrot.slane %v164_v5, 4  ;;  %v246_v20 = vrot.slane %v167_v7, 4  ;;  %v254_v21 = vrot.slane %v176_v11, 4  ;;  %v262_v22 = vrot.slane %v179_v14, 4  ;;  %v161_v24 = vld [vmem:[%s794_s17 + $0x8] sm:$0x3] }
  0x15   : > { %v183_v25 = vsel %vm182_vm0, %v181_v15, %v157_v2  ;;  %v191_v26 = vsel %vm182_vm0, %v190_v16, %v160_v3  ;;  %v199_v27 = vsel %vm182_vm0, %v198_v17, %v169_v8  ;;  %v207_v28 = vsel %vm182_vm0, %v206_v18, %v172_v9  ;;  %v170_v29 = vld [vmem:[%s794_s17 + $0x1a] sm:$0x3]  ;;  %v173_v30 = vld [vmem:[%s794_s17 + $0x20] sm:$0x3]  ;;  %v159_v7 = vld [vmem:[%s794_s17 + $0x4] sm:$0x3] }
  0x16   : > { %v187_v31 = vperm.slane %v183_v25, %v807_v13  ;;  %v195_v32 = vperm.slane %v191_v26, %v807_v13  ;;  %v203_v33 = vperm.slane %v199_v27, %v807_v13  ;;  %v211_v34 = vperm.slane %v207_v28, %v807_v13  ;;  %v162_v8 = vld [vmem:[%s794_s17 + $0xa] sm:$0x3]  ;;  %v165_v9 = vld [vmem:[%s794_s17 + $0x10] sm:$0x3]  ;;  %v168_v10 = vld [vmem:[%s794_s17 + $0x16] sm:$0x3] }
  0x17   : > { %v239_v37 = vsel %vm182_vm0, %v238_v19, %v158_v23  ;;  %v247_v38 = vsel %vm182_vm0, %v246_v20, %v161_v24  ;;  %v255_v39 = vsel %vm182_vm0, %v254_v21, %v170_v29  ;;  %v263_v40 = vsel %vm182_vm0, %v262_v22, %v173_v30  ;;  %v171_v11 = vld [vmem:[%s794_s17 + $0x1c] sm:$0x3]  ;;  %v174_v15 = vld [vmem:[%s794_s17 + $0x22] sm:$0x3]  ;;  %v177_v16 = vld [vmem:[%s794_s17 + $0x28] sm:$0x3] }
  0x18   : > { %v216_v35 = vpack.i.b16 %v195_v32, %v187_v31  ;;  %v228_v36 = vpack.i.b16 %v211_v34, %v203_v33  ;;  %v827_v41 = vperm.slane %v239_v37, %v807_v13  ;;  %v830_v42 = vperm.slane %v247_v38, %v807_v13  ;;  %v180_v17 = vld [vmem:[%s794_s17 + $0x2e] sm:$0x3] }
  0x19   : > { %v833_v43 = vperm.slane %v255_v39, %v807_v13  ;;  %v836_v44 = vperm.slane %v263_v40, %v807_v13  ;;  %v217_v48 = vshrl.u32 %v187_v31, 16  ;;  %v218_v49 = vshrl.u32 %v195_v32, 16 }
  0x1a   : > { %355 = vst [vmem:[#allocation1] ss:$4 sm:$0xff] %v216_v35  ;;  %v272_v45 = vpack.i.b16 %v830_v42, %v827_v41  ;;  %v229_v50 = vshrl.u32 %v203_v33, 16  ;;  %v230_v51 = vshrl.u32 %v211_v34, 16  ;;  %v273_v55 = vshrl.u32 %v827_v41, 16 }
  0x1b   : > { %358 = vst [vmem:[#allocation1 + $0x1] ss:$4 sm:$0xff] %v228_v36  ;;  %v284_v46 = vpack.i.b16 %v836_v44, %v833_v43  ;;  %v219_v52 = vpack.i.b16 %v218_v49, %v217_v48  ;;  %v274_v56 = vshrl.u32 %v830_v42, 16  ;;  %v285_v57 = vshrl.u32 %v833_v43, 16 }
  0x1c   : > { %v231_v53 = vpack.i.b16 %v230_v51, %v229_v50  ;;  %v286_v58 = vshrl.u32 %v836_v44, 16  ;;  %v188_v61 = vrot.slane %v187_v31, 4  ;;  %v196_v62 = vrot.slane %v195_v32, 4 }
  0x1d   : > { %v275_v59 = vpack.i.b16 %v274_v56, %v273_v55  ;;  %v204_v63 = vrot.slane %v203_v33, 4  ;;  %v212_v0 = vrot.slane %v211_v34, 4  ;;  %v294_v18 = vrot.slane %v165_v9, 4 }
  0x1e   : > { %v287_v60 = vpack.i.b16 %v286_v58, %v285_v57  ;;  %v189_v2 = vsel %vm182_vm0, 0, %v188_v61  ;;  %v197_v3 = vsel %vm182_vm0, 0, %v196_v62  ;;  %v302_v19 = vrot.slane %v168_v10, 4  ;;  %v732_v62 = vld [vmem:[%s151_s14] ss:$0 sm:$0xff] }
  0x1f   : > { %v205_v4 = vsel %vm182_vm0, 0, %v204_v63  ;;  %v213_v5 = vsel %vm182_vm0, 0, %v212_v0  ;;  %v222_v12 = vpack.i.b16 %v197_v3, %v189_v2  ;;  %v310_v20 = vrot.slane %v177_v16, 4 }
  0x20   : > { %v234_v14 = vpack.i.b16 %v213_v5, %v205_v4  ;;  %v318_v21 = vrot.slane %v180_v17, 4  ;;  %v244_v22 = vrot.slane %v827_v41, 4  ;;  %v252_v23 = vrot.slane %v830_v42, 4 }
  0x21   : > { %v260_v24 = vrot.slane %v833_v43, 4  ;;  %v268_v25 = vrot.slane %v836_v44, 4  ;;  %v295_v27 = vsel %vm182_vm0, %v294_v18, %v159_v7  ;;  %v303_v28 = vsel %vm182_vm0, %v302_v19, %v162_v8 }
  0x22   : > { %v842_v47 = vld.sshfl [vmem:[#allocation1] sm:$0xff pattern:$0x73625140]  ;;  %v311_v29 = vsel %vm182_vm0, %v310_v20, %v171_v11  ;;  %v319_v30 = vsel %vm182_vm0, %v318_v21, %v174_v15  ;;  %v871_v32 = vperm.slane %v295_v27, %v807_v13  ;;  %v874_v33 = vperm.slane %v303_v28, %v807_v13 }
  0x23   : > { %361 = vst [vmem:[#allocation1] ss:$4 sm:$0xff] %v272_v45  ;;  %v877_v34 = vperm.slane %v311_v29, %v807_v13  ;;  %v880_v35 = vperm.slane %v319_v30, %v807_v13  ;;  %v245_v36 = vsel %vm182_vm0, 0, %v244_v22  ;;  %v253_v37 = vsel %vm182_vm0, 0, %v252_v23 }
  0x24   : > { %364 = vst [vmem:[#allocation1 + $0x1] ss:$4 sm:$0xff] %v284_v46  ;;  %v261_v38 = vsel %vm182_vm0, 0, %v260_v24  ;;  %v269_v39 = vsel %vm182_vm0, 0, %v268_v25  ;;  %v278_v40 = vpack.i.b16 %v253_v37, %v245_v36  ;;  %v223_v13 = vshrl.u32 %v189_v2, 16 }
  0x25   : > { %v290_v41 = vpack.i.b16 %v269_v39, %v261_v38  ;;  %v224_v43 = vshrl.u32 %v197_v3, 16  ;;  %v235_v44 = vshrl.u32 %v205_v4, 16  ;;  %v236_v45 = vshrl.u32 %v213_v5, 16 }
  0x26   : > { %v279_v50 = vshrl.u32 %v245_v36, 16  ;;  %v280_v51 = vshrl.u32 %v253_v37, 16  ;;  %v328_v57 = vpack.i.b16 %v874_v33, %v871_v32  ;;  %v340_v58 = vpack.i.b16 %v880_v35, %v877_v34 }
  0x27   : > { %v225_v46 = vpack.i.b16 %v224_v43, %v223_v13  ;;  %v237_v48 = vpack.i.b16 %v236_v45, %v235_v44  ;;  %v329_v15 = vshrl.u32 %v871_v32, 16  ;;  %v330_v16 = vshrl.u32 %v874_v33, 16 }
  0x28   : > { %v341_v17 = vshrl.u32 %v877_v34, 16  ;;  %v342_v18 = vshrl.u32 %v880_v35, 16  ;;  %v300_v24 = vrot.slane %v871_v32, 4  ;;  %v308_v25 = vrot.slane %v874_v33, 4 }
  0x29   : > { %v331_v19 = vpack.i.b16 %v330_v16, %v329_v15  ;;  %v324_v27 = vrot.slane %v880_v35, 4 }
  0x2a   : > { %v343_v20 = vpack.i.b16 %v342_v18, %v341_v17  ;;  %v301_v28 = vsel %vm182_vm0, 0, %v300_v24  ;;  %v309_v29 = vsel %vm182_vm0, 0, %v308_v25 }
  0x2b   : > { %v365_v54 = vld.sshfl [vmem:[#allocation1] sm:$0xff pattern:$0x73625140]  ;;  %v334_v36 = vpack.i.b16 %v309_v29, %v301_v28 }
  0x2c   : > { %385 = vst [vmem:[#allocation1] ss:$4 sm:$0xff] %v219_v52  ;;  %v369_v6 = vsel %vm366_vm1, %v365_v54, 0  ;;  %v291_v52 = vshrl.u32 %v261_v38, 16  ;;  %v281_v54 = vpack.i.b16 %v280_v51, %v279_v50  ;;  %v335_v38 = vshrl.u32 %v301_v28, 16 }
  0x2d   : > { %388 = vst [vmem:[#allocation1 + $0x1] ss:$4 sm:$0xff] %v231_v53  ;;  %378 = vmatpush.bf16.xpose.msra.mxu0 %v369_v6  ;;  %v292_v53 = vshrl.u32 %v269_v39, 16  ;;  %v336_v39 = vshrl.u32 %v309_v29, 16 }
  0x2f   : > { %v293_v55 = vpack.i.b16 %v292_v53, %v291_v52 }
  0x34   : > { %v389_v1 = vld.sshfl [vmem:[#allocation1] sm:$0xff pattern:$0x73625140]  ;;  %709 = vmatmul.msk.bf16.vlgmr.msra.gmra.mxu0 %vm366_vm1, %v842_v47 }
  0x35   : > { %391 = vst [vmem:[#allocation1] ss:$4 sm:$0xff] %v275_v59 }
  0x36   : > { %394 = vst [vmem:[#allocation1 + $0x1] ss:$4 sm:$0xff] %v287_v60 }
  0x3d   : > { %v395_v26 = vld.sshfl [vmem:[#allocation1] sm:$0xff pattern:$0x73625140] }
  0x3e   : > { %v398_v31 = vsel %vm366_vm1, %v395_v26, 0  ;;  %414 = vst [vmem:[#allocation1] ss:$4 sm:$0xff] %v222_v12  ;;  %v316_v26 = vrot.slane %v877_v34, 4  ;;  %v337_v34 = vpack.i.b16 %v336_v39, %v335_v38 }
  0x3f   : > { %407 = vmatpush.bf16.xpose.msra.mxu1 %v398_v31  ;;  %417 = vst [vmem:[#allocation1 + $0x1] ss:$4 sm:$0xff] %v234_v14  ;;  %v325_v31 = vsel %vm182_vm0, 0, %v324_v27 }
  0x40   : > { %v317_v30 = vsel %vm182_vm0, 0, %v316_v26  ;;  %v348_v33 = vshrl.u32 %v325_v31, 16 }
  0x41   : > { %v346_v37 = vpack.i.b16 %v325_v31, %v317_v30  ;;  %v347_v32 = vshrl.u32 %v317_v30, 16 }
  0x43   : > { %v349_v35 = vpack.i.b16 %v348_v33, %v347_v32 }
  0x46   : > { %710 = vmatmul.msk.bf16.vlgmr.msra.gmra.mxu1 %vm366_vm1, %v389_v1  ;;  %v418_v42 = vld.sshfl [vmem:[#allocation1] sm:$0xff pattern:$0x73625140] }
  0x47   : > { %420 = vst [vmem:[#allocation1] ss:$4 sm:$0xff] %v278_v40 }
  0x48   : > { %423 = vst [vmem:[#allocation1 + $0x1] ss:$4 sm:$0xff] %v290_v41 }
  0x4f   : > { %v424_v49 = vld.sshfl [vmem:[#allocation1] sm:$0xff pattern:$0x73625140] }
  0x50   : > { %v427_v47 = vsel %vm366_vm1, %v424_v49, 0  ;;  %443 = vst [vmem:[#allocation1] ss:$4 sm:$0xff] %v225_v46 }
  0x51   : > { %436 = vmatpush.bf16.xpose.msra.mxu2 %v427_v47  ;;  %446 = vst [vmem:[#allocation1 + $0x1] ss:$4 sm:$0xff] %v237_v48 }
  0x58   : > { %711 = vmatmul.msk.bf16.vlgmr.msra.gmra.mxu2 %vm366_vm1, %v418_v42  ;;  %v447_v56 = vld.sshfl [vmem:[#allocation1] sm:$0xff pattern:$0x73625140] }
  0x59   : > { %449 = vst [vmem:[#allocation1] ss:$4 sm:$0xff] %v281_v54 }
  0x5a   : > { %452 = vst [vmem:[#allocation1 + $0x1] ss:$4 sm:$0xff] %v293_v55 }
  0x61   : > { %v453_v59 = vld.sshfl [vmem:[#allocation1] sm:$0xff pattern:$0x73625140] }
  0x62   : > { %v456_v60 = vsel %vm366_vm1, %v453_v59, 0  ;;  %516 = vst [vmem:[#allocation1] ss:$4 sm:$0xff] %v328_v57 }
  0x63   : > { %465 = vmatpush.bf16.xpose.msra.mxu3 %v456_v60  ;;  %519 = vst [vmem:[#allocation1 + $0x1] ss:$4 sm:$0xff] %v340_v58 }
  0x6a   : > { %712 = vmatmul.msk.bf16.vlgmr.msra.gmra.mxu3 %vm366_vm1, %v447_v56  ;;  %v520_v21 = vld.sshfl [vmem:[#allocation1] sm:$0xff pattern:$0x73625140] }
  0x6b   : > { %541 = vst [vmem:[#allocation1] ss:$4 sm:$0xff] %v331_v19  ;;  %v525_v44 = vsel %vm524_vm2, %v520_v21, 0 }
  0x6c   : > { %544 = vst [vmem:[#allocation1 + $0x1] ss:$4 sm:$0xff] %v343_v20  ;;  %534 = vmatpush.bf16.msrb.mxu0 %v525_v44 }
  0x73   : > { %v545_v22 = vld.sshfl [vmem:[#allocation1] sm:$0xff pattern:$0x73625140] }
  0x74   : > { %v549_v23 = vsel %vm524_vm2, %v545_v22, 0  ;;  %565 = vst [vmem:[#allocation1] ss:$4 sm:$0xff] %v334_v36 }
  0x75   : > { %558 = vmatpush.bf16.msrb.mxu1 %v549_v23  ;;  %568 = vst [vmem:[#allocation1 + $0x1] ss:$4 sm:$0xff] %v346_v37 }
  0x7c   : > { %v569_v13 = vld.sshfl [vmem:[#allocation1] sm:$0xff pattern:$0x73625140] }
  0x7d   : > { %v573_v43 = vsel %vm524_vm2, %v569_v13, 0  ;;  %589 = vst [vmem:[#allocation1] ss:$4 sm:$0xff] %v337_v34 }
  0x7e   : > { %582 = vmatpush.bf16.msrb.mxu2 %v573_v43  ;;  %592 = vst [vmem:[#allocation1 + $0x1] ss:$4 sm:$0xff] %v349_v35 }
  0x85   : > { %v593_v51 = vld.sshfl [vmem:[#allocation1] sm:$0xff pattern:$0x73625140] }
  0x86   : > { %v597_v52 = vsel %vm524_vm2, %v593_v51, 0 }
  0x87   : > { %606 = vmatpush.bf16.msrb.mxu3 %v597_v52 }
  0xb1   : > { %v380_v61 = vpop.f32.mrf.mxu0 }
  0xb2   : > { %v381_v3 = vadd.f32 %v732_v62, %v380_v61 }
  0xb4   : > { %v471_v5 = vsel %vm366_vm1, %v381_v3, -inf }
  0xb9   : > { %v382_v1 = vpop.f32.mrf.mxu0 }
  0xc3   : > { %v409_v63 = vpop.f32.mrf.mxu1 }
  0xc4   : > { %v410_v0 = vadd.f32 %v732_v62, %v409_v63 }
  0xc6   : > { %v474_v2 = vsel %vm366_vm1, %v410_v0, -inf }
  0xc7   : > { %475 = vmax.xlane.f32.xlu1 %v474_v2 }
  0xcb   : > { %v411_v4 = vpop.f32.mrf.mxu1 }
  0xcf   : > { %472 = vmax.xlane.f32.xlu1 %v471_v5 }
  0xdb   : > { %v438_v6 = vpop.f32.mrf.mxu2 }
  0xdc   : > { %v904_v7 = vadd.f32 %v732_v62, %v438_v6 }
  0xde   : > { %v477_v8 = vsel %vm366_vm1, %v904_v7, -inf }
  0xdf   : > { %478 = vmax.xlane.f32.xlu0 %v477_v8 }
  0xe3   : > { %v440_v9 = vpop.f32.mrf.mxu2 }
  0xed   : > { %v467_v10 = vpop.f32.mrf.mxu3 }
  0xee   : > { %v908_v11 = vadd.f32 %v732_v62, %v467_v10 }
  0xf0   : > { %v480_v12 = vsel %vm366_vm1, %v908_v11, -inf }
  0xf1   : > { %481 = vmax.xlane.f32.xlu0 %v480_v12 }
  0xf5   : > { %v469_v14 = vpop.f32.mrf.mxu3 }
 0x13a   : > { %v476_v40 = vpop.xlane.xlu1 %475 }
 0x13b   : > { %v484_v41 = vsub.f32 %v410_v0, %v476_v40 }
 0x13d   : > { %v489_v42 = vmul.f32 1.442695, %v484_v41 }
 0x13f   : > { %733 = vpow2.f32 %v489_v42 }
 0x142   : > { %v473_v45 = vpop.xlane.xlu1 %472 }
 0x143   : > { %v483_v46 = vsub.f32 %v381_v3, %v473_v45 }
 0x145   : > { %v734_v48 = vpop.eup %733  ;;  %v487_v49 = vmul.f32 1.442695, %v483_v46 }
 0x146   : > { %v498_v47 = vsel %vm366_vm1, %v734_v48, 0.0  ;;  %v512_v50 = vpack.c.bf16 %v734_v48, %v734_v48 }
 0x147   : > { %499 = vadd.xlane.f32.xlu2 %v498_v47  ;;  %735 = vpow2.f32 %v487_v49 }
 0x148   : > { %714 = vmatmul.msk.bf16.vlgmr.msrb.gmra.mxu1 %vm366_vm1, %v512_v50 }
 0x14d   : > { %v736_v53 = vpop.eup %735 }
 0x14e   : > { %v511_v54 = vpack.c.bf16 %v736_v53, %v736_v53  ;;  %v495_v55 = vsel %vm366_vm1, %v736_v53, 0.0 }
 0x14f   : > { %496 = vadd.xlane.f32.xlu1 %v495_v55 }
 0x150   : > { %713 = vmatmul.msk.bf16.vlgmr.msrb.gmra.mxu0 %vm366_vm1, %v511_v54 }
 0x152   : > { %v479_v56 = vpop.xlane.xlu0 %478 }
 0x153   : > { %v485_v57 = vsub.f32 %v904_v7, %v479_v56 }
 0x155   : > { %v491_v58 = vmul.f32 1.442695, %v485_v57 }
 0x157   : > { %737 = vpow2.f32 %v491_v58 }
 0x15d   : > { %v738_v59 = vpop.eup %737 }
 0x15e   : > { %v501_v60 = vsel %vm366_vm1, %v738_v59, 0.0  ;;  %v513_v61 = vpack.c.bf16 %v738_v59, %v738_v59 }
 0x15f   : > { %502 = vadd.xlane.f32.xlu2 %v501_v60 }
 0x160   : > { %715 = vmatmul.msk.bf16.vlgmr.msrb.gmra.mxu2 %vm366_vm1, %v513_v61 }
 0x164   : > { %v482_v62 = vpop.xlane.xlu0 %481 }
 0x165   : > { %v486_v63 = vsub.f32 %v908_v11, %v482_v62 }
 0x167   : > { %v493_v0 = vmul.f32 1.442695, %v486_v63 }
 0x169   : > { %739 = vpow2.f32 %v493_v0 }
 0x16f   : > { %v740_v1 = vpop.eup %739 }
 0x170   : > { %v504_v2 = vsel %vm366_vm1, %v740_v1, 0.0  ;;  %v514_v3 = vpack.c.bf16 %v740_v1, %v740_v1 }
 0x171   : > { %505 = vadd.xlane.f32.xlu0 %v504_v2 }
 0x172   : > { %716 = vmatmul.msk.bf16.vlgmr.msrb.gmra.mxu3 %vm366_vm1, %v514_v3 }
 0x1ba   : > { %v500_v4 = vpop.xlane.xlu2 %499 }
 0x1bb   : > { %741 = vrcp.f32 %v500_v4 }
 0x1c1   : > { %v742_v6 = vpop.eup %741 }
 0x1c2   : > { %v497_v5 = vpop.xlane.xlu1 %496 }
 0x1c3   : > { %743 = vrcp.f32 %v497_v5 }
 0x1c5   : > { %v560_v7 = vpop.f32.mrf.mxu1 }
 0x1c6   : > { %v613_v8 = vmul.f32 %v742_v6, %v560_v7 }
 0x1c8   : > { %v619_v9 = vpack.c.bf16 %v613_v8, %v613_v8 }
 0x1c9   : > { %v744_v10 = vpop.eup %743 }
 0x1ca   : > { %621 = vrot.lane.b32.xlu2 %v619_v9, %s758_s20 }
 0x1cd   : > { %v562_v11 = vpop.f32.mrf.mxu1  ;;  %v536_v12 = vpop.f32.mrf.mxu0 }
 0x1ce   : > { %v612_v14 = vmul.f32 %v744_v10, %v536_v12 }
 0x1d0   : > { %v616_v15 = vpack.c.bf16 %v612_v14, %v612_v14 }
 0x1d2   : > { %618 = vst.msk [vmem:[%s942_s24] sm:$0xf] %vm617_vm3, %v616_v15  ;;  %v503_v17 = vpop.xlane.xlu2 %502 }
 0x1d3   : > { %745 = vrcp.f32 %v503_v17 }
 0x1d5   : > { %v538_v16 = vpop.f32.mrf.mxu0 }
 0x1d9   : > { %v746_v18 = vpop.eup %745 }
 0x1e3   : > { %v584_v19 = vpop.f32.mrf.mxu2 }
 0x1e4   : > { %v614_v20 = vmul.f32 %v746_v18, %v584_v19  ;;  %v506_v23 = vpop.xlane.xlu0 %505 }
 0x1e5   : > { %747 = vrcp.f32 %v506_v23 }
 0x1e6   : > { %v626_v21 = vpack.c.bf16 %v614_v20, %v614_v20 }
 0x1e8   : > { %628 = vrot.lane.b32.xlu0 %v626_v21, %s759_s25 }
 0x1eb   : > { %v586_v22 = vpop.f32.mrf.mxu2  ;;  %v748_v24 = vpop.eup %747 }
 0x1f5   : > { %v608_v25 = vpop.f32.mrf.mxu3 }
 0x1f6   : > { %v615_v26 = vmul.f32 %v748_v24, %v608_v25 }
 0x1f8   : > { %v633_v27 = vpack.c.bf16 %v615_v26, %v615_v26 }
 0x1fa   : > { %635 = vrot.lane.b32.xlu1 %v633_v27, %s760_s26 }
 0x1fd   : > { %v610_v28 = vpop.f32.mrf.mxu3 }
 0x224   : > { %v622_v29 = vpop.permute.xlu2 %621 }
 0x225   : > { %625 = vst.msk [vmem:[%s942_s24] sm:$0xf] %vm624_vm4, %v622_v29 }
 0x25a   : > { %v629_v30 = vpop.permute.xlu0 %628 }
 0x25b   : > { %632 = vst.msk [vmem:[%s942_s24] sm:$0xf] %vm631_vm5, %v629_v30 }
 0x26c   : > { %v636_v31 = vpop.permute.xlu1 %635 }
 0x26d   : > { %639 = vst.msk [vmem:[%s942_s24] sm:$0xf] %vm638_vm6, %v636_v31 }
 0x26e PF: > { %s12_s9 = sadd.s32 1, %s755_s9  }
 0x26f   : > { %p9_p4 = scmp.ge.s32.totalorder %s12_s9, 4  }
 0x271   :  { %11 = sbr.rel (!%p9_p4) target bundleno = 1 (0x1), region = 73 }

// kernel: bart_pop_encoder.15
= control target key start
LH: loop header
LB: loop body
LE: loop exit
PB: predicated region body
PF: predicated region fallthrough
CT: control target
= control target key end

     0   :  { %vm19_vm0 = vcmask 523264   ;;  %v193_v1 = vmov 0.0   ;;  %vm43_vm1 = vcmask 261120   ;;  %vm167_vm9 = vcmask 519168   ;;  %s252_s1 = inlined_call_operand.vmem [shape: bf16[32,64], index: 1, kind: input, shape index: {}]   ;;  %s253_s0 = inlined_call_operand.vmem [shape: f32[16,32], index: 0, kind: input, shape index: {}]   ;;  %s254_s2 = inlined_call_operand.vmem [shape: f32[1,64], index: 2, kind: input, shape index: {}]   ;;  %s255_s3 = inlined_call_operand.vmem [shape: bf16[16,64], index: 3, kind: output, shape index: {}]  }
   0x1   :  { %v186_v0 = vld [vmem:[%s252_s1 + $0x8] sm:$0xff]  ;;  %20 = vst.msk [vmem:[#allocation2] sm:$0xff] %vm19_vm0, %v193_v1  ;;  %v185_v2 = vld [vmem:[%s252_s1] sm:$0xff] }
   0x2   :  { %21 = vst.msk [vmem:[#allocation2 + $0x8] sm:$0xff] %vm19_vm0, %v193_v1  ;;  %53 = vmatpush.bf16.msra.mxu0 %v186_v0  ;;  %v24_v3 = vld [vmem:[%s253_s0] sm:$0xff]  ;;  %v25_v4 = vld [vmem:[%s253_s0 + $0x8] sm:$0xff] }
   0x3   :  { %v26_v5 = vpack.c.bf16 %v25_v4, %v24_v3  ;;  %v188_v10 = vld [vmem:[%s254_s2] ss:$0 sm:$0xff] }
   0x6   :  { %54 = vmatpush.bf16.msra.mxu0 %v185_v2 }
   0x8   :  { %v22_v6 = vld [vmem:[#allocation2] sm:$0xff] }
   0x9   :  { %182 = vmatmul.msk.bf16.vlgmr.msra.gmra.mxu0 %vm43_vm1, %v26_v5  ;;  %v23_v9 = vld [vmem:[#allocation2 + $0x8] sm:$0xff] }
  0x86   :  { %v56_v7 = vpop.f32.mrf.mxu0 }
  0x87   :  { %v61_v8 = vadd.f32 %v56_v7, %v22_v6 }
  0x89   :  { %64 = vst.msk [vmem:[#allocation2] sm:$0xff] %vm19_vm0, %v61_v8 }
  0x8e   :  { %v58_v11 = vpop.f32.mrf.mxu0 }
  0x8f   :  { %v62_v12 = vadd.f32 %v58_v11, %v23_v9 }
  0x90   :  { %v69_v13 = vld [vmem:[#allocation2] sm:$0xff] }
  0x91   :  { %v232_v14 = vadd.f32 %v188_v10, %v69_v13  ;;  %65 = vst.msk [vmem:[#allocation2 + $0x8] sm:$0xff] %vm19_vm0, %v62_v12 }
  0x93   :  { %v79_v15 = vmul.f32 0.70710677, %v232_v14 }
  0x95   :  { %v81_v16 = vmul.f32 %v79_v15, %v79_v15 }
  0x97   :  { %v82_v17 = vmin.f32 %v81_v16, 16.0 }
  0x98   :  { %v70_v18 = vld [vmem:[#allocation2 + $0x8] sm:$0xff] }
  0x99   :  { %v83_v19 = vmul.f32 2.1237322e-06, %v82_v17  ;;  %v94_v20 = vmul.f32 3.8918573e-05, %v82_v17  ;;  %v236_v21 = vadd.f32 %v188_v10, %v70_v18 }
  0x9b   :  { %v84_v22 = vadd.f32 0.00028619796, %v83_v19  ;;  %v95_v23 = vadd.f32 0.001143296, %v94_v20  ;;  %v239_v24 = vmul.f32 0.70710677, %v236_v21 }
  0x9c   :  { %v77_v20 = vmul.f32 0.5, %v232_v14  ;;  %v78_v14 = vmul.f32 0.5, %v236_v21 }
  0x9d   :  { %v85_v25 = vmul.f32 %v84_v22, %v82_v17  ;;  %v96_v26 = vmul.f32 %v95_v23, %v82_v17  ;;  %v121_v27 = vmul.f32 %v239_v24, %v239_v24 }
  0x9f   :  { %v97_v28 = vadd.f32 0.014752088, %v96_v26  ;;  %v86_v29 = vadd.f32 0.0036580483, %v85_v25  ;;  %v122_v30 = vmin.f32 %v121_v27, 16.0 }
  0xa1   :  { %v98_v31 = vmul.f32 %v97_v28, %v82_v17  ;;  %v123_v32 = vmul.f32 2.1237322e-06, %v122_v30  ;;  %v134_v33 = vmul.f32 3.8918573e-05, %v122_v30  ;;  %v87_v35 = vmul.f32 %v86_v29, %v82_v17 }
  0xa3   :  { %v99_v34 = vadd.f32 0.112945676, %v98_v31  ;;  %v124_v36 = vadd.f32 0.00028619796, %v123_v32  ;;  %v135_v37 = vadd.f32 0.001143296, %v134_v33 }
  0xa4   :  { %v88_v42 = vadd.f32 0.05243302, %v87_v35 }
  0xa5   :  { %v100_v38 = vmul.f32 %v99_v34, %v82_v17  ;;  %v125_v39 = vmul.f32 %v124_v36, %v122_v30  ;;  %v136_v40 = vmul.f32 %v135_v37, %v122_v30 }
  0xa6   :  { %v89_v48 = vmul.f32 %v88_v42, %v82_v17 }
  0xa7   :  { %v101_v41 = vadd.f32 0.4994258, %v100_v38  ;;  %v137_v43 = vadd.f32 0.014752088, %v136_v40  ;;  %v126_v45 = vadd.f32 0.0036580483, %v125_v39 }
  0xa8   :  { %v90_v52 = vadd.f32 0.18741608, %v89_v48 }
  0xa9   :  { %v102_v44 = vmul.f32 %v101_v41, %v82_v17  ;;  %v138_v46 = vmul.f32 %v137_v43, %v122_v30  ;;  %v127_v50 = vmul.f32 %v126_v45, %v122_v30 }
  0xaa   :  { %v91_v57 = vmul.f32 %v90_v52, %v82_v17 }
  0xab   :  { %v103_v47 = vadd.f32 1.0, %v102_v44  ;;  %v139_v49 = vadd.f32 0.112945676, %v138_v46  ;;  %v128_v54 = vadd.f32 0.05243302, %v127_v50 }
  0xac   :  { %v92_v63 = vadd.f32 1.1283791, %v91_v57 }
  0xad   :  { %189 = vrcp.f32 %v103_v47  ;;  %v140_v51 = vmul.f32 %v139_v49, %v122_v30  ;;  %v129_v60 = vmul.f32 %v128_v54, %v122_v30  ;;  %v115_v62 = vand.u32 2147483648, %v103_v47 }
  0xae   :  { %v113_v1 = vand.u32 2147483647, %v103_v47  ;;  %vm109_vm3 = vweird.f32 %v103_v47  ;;  %v93_v6 = vmul.f32 %v92_v63, %v79_v15 }
  0xaf   :  { %v141_v53 = vadd.f32 0.4994258, %v140_v51  ;;  %v130_v2 = vadd.f32 0.18741608, %v129_v60  ;;  %v116_v4 = vor.u32 1.1754944e-38, %v115_v62 }
  0xb0   :  { %vm114_vm5 = vcmp.eq.f32.partialorder %v113_v1, 8.507059e+37 }
  0xb1   :  { %v142_v55 = vmul.f32 %v141_v53, %v122_v30  ;;  %v131_v9 = vmul.f32 %v130_v2, %v122_v30 }
  0xb3   :  { %v190_v56 = vpop.eup %189  ;;  %v143_v59 = vadd.f32 1.0, %v142_v55  ;;  %v132_v17 = vadd.f32 1.1283791, %v131_v9 }
  0xb4   :  { %v105_v58 = vmul.f32 %v190_v56, %v103_v47  ;;  %vm110_vm2 = vweird.f32 %v190_v56 }
  0xb5   :  { %191 = vrcp.f32 %v143_v59  ;;  %vm111_vm4 = vmor %vm109_vm3, %vm110_vm2  ;;  %v155_v16 = vand.u32 2147483648, %v143_v59  ;;  %v153_v19 = vand.u32 2147483647, %v143_v59  ;;  %vm149_vm7 = vweird.f32 %v143_v59 }
  0xb6   :  { %v106_v61 = vsub.f32 1.0, %v105_v58  ;;  %v133_v26 = vmul.f32 %v132_v17, %v239_v24 }
  0xb7   :  { %v156_v15 = vor.u32 1.1754944e-38, %v155_v16  ;;  %vm154_vm10 = vcmp.eq.f32.partialorder %v153_v19, 8.507059e+37 }
  0xb8   :  { %v107_v0 = vmul.f32 %v190_v56, %v106_v61 }
  0xba   :  { %v108_v3 = vadd.f32 %v190_v56, %v107_v0 }
  0xbb   :  { %v192_v5 = vpop.eup %191 }
  0xbc   :  { %v112_v7 = vsel %vm111_vm4, %v190_v56, %v108_v3  ;;  %v145_v10 = vmul.f32 %v192_v5, %v143_v59  ;;  %vm150_vm6 = vweird.f32 %v192_v5 }
  0xbd   :  { %v117_v8 = vsel %vm114_vm5, %v116_v4, %v112_v7  ;;  %vm151_vm8 = vmor %vm149_vm7, %vm150_vm6 }
  0xbe   :  { %v118_v11 = vmul.f32 %v117_v8, %v93_v6  ;;  %v146_v12 = vsub.f32 1.0, %v145_v10 }
  0xc0   :  { %v183_v13 = vclamps-f32 %v118_v11, 1.0  ;;  %v147_v18 = vmul.f32 %v192_v5, %v146_v12 }
  0xc2   :  { %v161_v22 = vadd.f32 1.0, %v183_v13  ;;  %v148_v23 = vadd.f32 %v192_v5, %v147_v18 }
  0xc4   :  { %v163_v25 = vmul.f32 %v161_v22, %v77_v20  ;;  %v152_v27 = vsel %vm151_vm8, %v192_v5, %v148_v23 }
  0xc5   :  { %v157_v29 = vsel %vm154_vm10, %v156_v15, %v152_v27 }
  0xc6   :  { %v165_v28 = vpack.c.bf16 %v163_v25, %v163_v25  ;;  %v158_v30 = vmul.f32 %v157_v29, %v133_v26 }
  0xc8   :  { %168 = vst.msk [vmem:[%s255_s3] sm:$0xf] %vm167_vm9, %v165_v28  ;;  %v184_v31 = vclamps-f32 %v158_v30, 1.0 }
  0xca   :  { %v162_v32 = vadd.f32 1.0, %v184_v31 }
  0xcc   :  { %v164_v33 = vmul.f32 %v162_v32, %v78_v14 }
  0xce   :  { %v166_v34 = vpack.c.bf16 %v164_v33, %v164_v33 }
  0xd0   :  { %169 = vst.msk [vmem:[%s255_s3 + $0x4] sm:$0xf] %vm167_vm9, %v166_v34 }

// kernel: bart_pop_encoder.16
= control target key start
LH: loop header
LB: loop body
LE: loop exit
PB: predicated region body
PF: predicated region fallthrough
CT: control target
= control target key end

     0   :  { %vm28_vm0 = vcmask 261120   ;;  %v216_v1 = vmov 0.0   ;;  %vm72_vm1 = vcmask 523264   ;;  %v217_v23 = vmov 32.0   ;;  %s299_s1 = inlined_call_operand.vmem [shape: bf16[64,32], index: 1, kind: input, shape index: {}]   ;;  %s300_s0 = inlined_call_operand.vmem [shape: bf16[16,64], index: 0, kind: input, shape index: {}]   ;;  %s301_s2 = inlined_call_operand.vmem [shape: f32[1,32], index: 2, kind: input, shape index: {}]   ;;  %s302_s3 = inlined_call_operand.vmem [shape: f32[16,32], index: 3, kind: input, shape index: {}]   ;;  %s303_s4 = inlined_call_operand.vmem [shape: f32[1,32], index: 4, kind: input, shape index: {}]   ;;  %s304_s5 = inlined_call_operand.vmem [shape: f32[1,32], index: 5, kind: input, shape index: {}]   ;;  %s305_s6 = inlined_call_operand.vmem [shape: f32[16,32], index: 6, kind: output, shape index: {}]  }
   0x1   :  { %v204_v0 = vld [vmem:[%s299_s1 + $0x18] sm:$0xff]  ;;  %29 = vst.msk [vmem:[#allocation2] sm:$0xff] %vm28_vm0, %v216_v1  ;;  %v203_v2 = vld [vmem:[%s299_s1 + $0x10] sm:$0xff]  ;;  %v202_v3 = vld [vmem:[%s299_s1 + $0x8] sm:$0xff]  ;;  %210 = vrcp.f32 %v217_v23 }
   0x2   :  { %30 = vst.msk [vmem:[#allocation2 + $0x8] sm:$0xff] %vm28_vm0, %v216_v1  ;;  %80 = vmatpush.bf16.msra.mxu0 %v204_v0  ;;  %v201_v4 = vld [vmem:[%s299_s1] sm:$0xff]  ;;  %v107_v19 = vld [vmem:[%s302_s3 + $0x8] sm:$0xff] }
   0x3   :  { %v200_v5 = vld [vmem:[%s300_s0] sm:$0xff] }
   0x4   :  { %v207_v10 = vld [vmem:[%s301_s2] ss:$0 sm:$0xff] }
   0x5   :  { %v106_v14 = vld [vmem:[%s302_s3] sm:$0xff] }
   0x6   :  { %81 = vmatpush.bf16.msra.mxu0 %v203_v2  ;;  %v208_v54 = vld [vmem:[%s303_s4] ss:$0 sm:$0xff] }
   0x7   :  { %v211_v24 = vpop.eup %210  ;;  %v209_v57 = vld [vmem:[%s304_s5] ss:$0 sm:$0xff] }
   0x8   :  { %v31_v6 = vld [vmem:[#allocation2] sm:$0xff]  ;;  %v117_v25 = vmul.f32 32.0, %v211_v24  ;;  %vm121_vm2 = vweird.f32 %v211_v24 }
   0x9   :  { %v32_v9 = vld [vmem:[#allocation2 + $0x8] sm:$0xff] }
   0xa   :  { %82 = vmatpush.bf16.msra.mxu0 %v202_v3  ;;  %v118_v26 = vsub.f32 1.0, %v117_v25 }
   0xc   :  { %v119_v27 = vmul.f32 %v211_v24, %v118_v26 }
   0xe   :  { %83 = vmatpush.bf16.msra.mxu0 %v201_v4  ;;  %v120_v28 = vadd.f32 %v211_v24, %v119_v27 }
  0x10   :  { %v122_v29 = vsel %vm121_vm2, %v211_v24, %v120_v28 }
  0x11   :  { %199 = vmatmul.msk.bf16.vlgmr.msra.gmra.mxu0 %vm72_vm1, %v200_v5 }
  0x8e   :  { %v85_v7 = vpop.f32.mrf.mxu0 }
  0x8f   :  { %v90_v8 = vadd.f32 %v85_v7, %v31_v6 }
  0x91   :  { %93 = vst.msk [vmem:[#allocation2] sm:$0xff] %vm28_vm0, %v90_v8 }
  0x96   :  { %v87_v11 = vpop.f32.mrf.mxu0 }
  0x97   :  { %v91_v12 = vadd.f32 %v87_v11, %v32_v9 }
  0x98   :  { %v98_v13 = vld [vmem:[#allocation2] sm:$0xff] }
  0x99   :  { %94 = vst.msk [vmem:[#allocation2 + $0x8] sm:$0xff] %vm28_vm0, %v91_v12  ;;  %v104_v15 = vadd.f32 %v207_v10, %v98_v13 }
  0x9b   :  { %v108_v16 = vadd.f32 %v106_v14, %v104_v15 }
  0x9d   :  { %v110_v17 = vsel %vm28_vm0, %v108_v16, 0.0 }
  0x9e   :  { %111 = vadd.xlane.f32.xlu0 %v110_v17 }
  0xa0   :  { %v99_v18 = vld [vmem:[#allocation2 + $0x8] sm:$0xff] }
  0xa1   :  { %v105_v20 = vadd.f32 %v207_v10, %v99_v18 }
  0xa3   :  { %v109_v21 = vadd.f32 %v107_v19, %v105_v20 }
  0xa5   :  { %v113_v22 = vsel %vm28_vm0, %v109_v21, 0.0 }
  0xa6   :  { %114 = vadd.xlane.f32.xlu0 %v113_v22 }
 0x111   :  { %v112_v30 = vpop.xlane.xlu0 %111 }
 0x112   :  { %v123_v31 = vmul.f32 %v122_v29, %v112_v30 }
 0x114   :  { %v125_v32 = vsub.f32 %v108_v16, %v123_v31 }
 0x116   :  { %v127_v33 = vmul.f32 %v125_v32, %v125_v32 }
 0x118   :  { %v129_v34 = vsel %vm28_vm0, %v127_v33, 0.0 }
 0x119   :  { %130 = vadd.xlane.f32.xlu1 %v129_v34  ;;  %v115_v35 = vpop.xlane.xlu0 %114 }
 0x11a   :  { %v124_v36 = vmul.f32 %v122_v29, %v115_v35 }
 0x11c   :  { %v126_v37 = vsub.f32 %v109_v21, %v124_v36 }
 0x11e   :  { %v128_v38 = vmul.f32 %v126_v37, %v126_v37 }
 0x120   :  { %v132_v39 = vsel %vm28_vm0, %v128_v38, 0.0 }
 0x121   :  { %133 = vadd.xlane.f32.xlu1 %v132_v39 }
 0x18c   :  { %v131_v40 = vpop.xlane.xlu1 %130 }
 0x18d   :  { %v135_v41 = vmul.f32 %v131_v40, %v122_v29 }
 0x18f   :  { %v137_v42 = vadd.f32 1e-05, %v135_v41 }
 0x191   :  { %212 = vrsqrt.f32 %v137_v42  ;;  %vm145_vm4 = vweird.f32 %v137_v42 }
 0x194   :  { %v134_v43 = vpop.xlane.xlu1 %133 }
 0x195   :  { %v136_v44 = vmul.f32 %v134_v43, %v122_v29 }
 0x197   :  { %v213_v45 = vpop.eup %212  ;;  %v138_v46 = vadd.f32 1e-05, %v136_v44 }
 0x198   :  { %v140_v47 = vmul.f32 %v213_v45, %v137_v42  ;;  %vm146_vm3 = vweird.f32 %v213_v45 }
 0x199   :  { %214 = vrsqrt.f32 %v138_v46  ;;  %vm147_vm5 = vmor %vm145_vm4, %vm146_vm3  ;;  %vm155_vm7 = vweird.f32 %v138_v46 }
 0x19a   :  { %v141_v48 = vmul.f32 %v213_v45, %v140_v47 }
 0x19c   :  { %v142_v49 = vmul.f32 0.5, %v141_v48 }
 0x19e   :  { %v143_v50 = vsub.f32 1.5, %v142_v49 }
 0x19f   :  { %v215_v51 = vpop.eup %214 }
 0x1a0   :  { %v144_v52 = vmul.f32 %v213_v45, %v143_v50  ;;  %v150_v53 = vmul.f32 %v215_v51, %v138_v46  ;;  %vm156_vm6 = vweird.f32 %v215_v51 }
 0x1a1   :  { %vm157_vm8 = vmor %vm155_vm7, %vm156_vm6 }
 0x1a2   :  { %v148_v55 = vsel %vm147_vm5, %v213_v45, %v144_v52  ;;  %v151_v56 = vmul.f32 %v215_v51, %v150_v53 }
 0x1a3   :  { %v159_v58 = vmul.f32 %v148_v55, %v125_v32 }
 0x1a4   :  { %v152_v59 = vmul.f32 0.5, %v151_v56 }
 0x1a5   :  { %v165_v60 = vmul.f32 %v208_v54, %v159_v58 }
 0x1a6   :  { %v153_v61 = vsub.f32 1.5, %v152_v59 }
 0x1a7   :  { %v171_v62 = vadd.f32 %v209_v57, %v165_v60 }
 0x1a8   :  { %v154_v63 = vmul.f32 %v215_v51, %v153_v61 }
 0x1a9   :  { %173 = vst.msk [vmem:[%s305_s6] sm:$0xff] %vm28_vm0, %v171_v62 }
 0x1aa   :  { %v158_v0 = vsel %vm157_vm8, %v215_v51, %v154_v63 }
 0x1ab   :  { %v160_v1 = vmul.f32 %v158_v0, %v126_v37 }
 0x1ad   :  { %v166_v2 = vmul.f32 %v208_v54, %v160_v1 }
 0x1af   :  { %v172_v3 = vadd.f32 %v209_v57, %v166_v2 }
 0x1b1   :  { %174 = vst.msk [vmem:[%s305_s6 + $0x8] sm:$0xff] %vm28_vm0, %v172_v3 }

// kernel: bart_pop_encoder.21
= control target key start
LH: loop header
LB: loop body
LE: loop exit
PB: predicated region body
PF: predicated region fallthrough
CT: control target
= control target key end

     0   :  { %vm29_vm0 = vcmask 261120   ;;  %v260_v1 = vmov 0.0   ;;  %s343_s0 = inlined_call_operand.vmem [shape: bf16[16,64], index: 0, kind: input, shape index: {}]   ;;  %s344_s1 = inlined_call_operand.vmem [shape: bf16[64,32], index: 1, kind: input, shape index: {}]   ;;  %s345_s2 = inlined_call_operand.vmem [shape: f32[1,32], index: 2, kind: input, shape index: {}]   ;;  %s346_s3 = inlined_call_operand.vmem [shape: f32[16,32], index: 3, kind: input, shape index: {}]   ;;  %s347_s4 = inlined_call_operand.vmem [shape: f32[1,32], index: 4, kind: input, shape index: {}]   ;;  %s348_s5 = inlined_call_operand.vmem [shape: f32[1,32], index: 5, kind: input, shape index: {}]   ;;  %s349_s6 = inlined_call_operand.hbm [shape: f32[16,32], index: 6, kind: output, shape index: {}]  }
   0x1   :  { %v219_v0 = vld [vmem:[%s344_s1 + $0x18] sm:$0xff]  ;;  %30 = vst.msk [vmem:[#allocation2] sm:$0xff] %vm29_vm0, %v260_v1  ;;  %v218_v2 = vld [vmem:[%s344_s1 + $0x10] sm:$0xff] }
   0x2   :  { %81 = vmatpush.bf16.msra.mxu0 %v219_v0  ;;  %31 = vst.msk [vmem:[#allocation2 + $0x8] sm:$0xff] %vm29_vm0, %v260_v1 }
   0x3   :  { %11 = vsyncpa [#allocation4], 0  ;;  %v217_v3 = vld [vmem:[%s344_s1 + $0x8] sm:$0xff]  ;;  %v216_v4 = vld [vmem:[%s344_s1] sm:$0xff]  ;;  %vm73_vm1 = vcmask 523264   ;;  %v261_v23 = vmov 32.0  }
   0x4   :  { %v215_v5 = vld [vmem:[%s343_s0] sm:$0xff]  ;;  %v108_v19 = vld [vmem:[%s346_s3 + $0x8] sm:$0xff]  ;;  %228 = vrcp.f32 %v261_v23  ;;  %s182_s16 = sshll.u32 %s349_s6, 4  ;;  %s264_s17 = smov 8   ;;  %s183_s16 = int_to_ptr.hbm [resolvable:$true] %s182_s16 }
   0x5   :  { %v225_v10 = vld [vmem:[%s345_s2] ss:$0 sm:$0xff] }
   0x6   :  { %82 = vmatpush.bf16.msra.mxu0 %v218_v2  ;;  %v107_v14 = vld [vmem:[%s346_s3] sm:$0xff] }
   0x7   :  { %v226_v54 = vld [vmem:[%s347_s4] ss:$0 sm:$0xff]  ;;  %s262_s4 = smov [#allocation3]  }
   0x8   :  { %v32_v6 = vld [vmem:[#allocation2] sm:$0xff]  ;;  %s180_s13 = sshll.u32 %s262_s4, 4  ;;  %s181_s13 = int_to_ptr.vmem [resolvable:$true] %s180_s13 }
   0x9   :  { %v33_v9 = vld [vmem:[#allocation2 + $0x8] sm:$0xff]  ;;  %v227_v58 = vld [vmem:[%s348_s5] ss:$0 sm:$0xff]  ;;  %s263_s5 = smov 128  }
   0xa   :  { %83 = vmatpush.bf16.msra.mxu0 %v217_v3  ;;  %v229_v24 = vpop.eup %228 }
   0xb   :  { %v118_v25 = vmul.f32 32.0, %v229_v24  ;;  %vm122_vm2 = vweird.f32 %v229_v24 }
   0xd   :  { %v119_v26 = vsub.f32 1.0, %v118_v25 }
   0xe   :  { %84 = vmatpush.bf16.msra.mxu0 %v216_v4 }
   0xf   :  { %v120_v27 = vmul.f32 %v229_v24, %v119_v26 }
  0x11   :  { %214 = vmatmul.msk.bf16.vlgmr.msra.gmra.mxu0 %vm73_vm1, %v215_v5  ;;  %v121_v28 = vadd.f32 %v229_v24, %v120_v27 }
  0x13   :  { %v123_v29 = vsel %vm122_vm2, %v229_v24, %v121_v28 }
  0x8e   :  { %v86_v7 = vpop.f32.mrf.mxu0 }
  0x8f   :  { %v91_v8 = vadd.f32 %v86_v7, %v32_v6 }
  0x91   :  { %94 = vst.msk [vmem:[#allocation2] sm:$0xff] %vm29_vm0, %v91_v8 }
  0x96   :  { %v88_v11 = vpop.f32.mrf.mxu0 }
  0x97   :  { %v92_v12 = vadd.f32 %v88_v11, %v33_v9 }
  0x98   :  { %v99_v13 = vld [vmem:[#allocation2] sm:$0xff] }
  0x99   :  { %95 = vst.msk [vmem:[#allocation2 + $0x8] sm:$0xff] %vm29_vm0, %v92_v12  ;;  %v105_v15 = vadd.f32 %v225_v10, %v99_v13 }
  0x9b   :  { %v109_v16 = vadd.f32 %v107_v14, %v105_v15 }
  0x9d   :  { %v111_v17 = vsel %vm29_vm0, %v109_v16, 0.0 }
  0x9e   :  { %112 = vadd.xlane.f32.xlu0 %v111_v17 }
  0xa0   :  { %v100_v18 = vld [vmem:[#allocation2 + $0x8] sm:$0xff] }
  0xa1   :  { %v106_v20 = vadd.f32 %v225_v10, %v100_v18 }
  0xa3   :  { %v110_v21 = vadd.f32 %v108_v19, %v106_v20 }
  0xa5   :  { %v114_v22 = vsel %vm29_vm0, %v110_v21, 0.0 }
  0xa6   :  { %115 = vadd.xlane.f32.xlu0 %v114_v22 }
 0x111   :  { %v113_v30 = vpop.xlane.xlu0 %112 }
 0x112   :  { %v124_v31 = vmul.f32 %v123_v29, %v113_v30 }
 0x114   :  { %v126_v32 = vsub.f32 %v109_v16, %v124_v31 }
 0x116   :  { %v128_v33 = vmul.f32 %v126_v32, %v126_v32 }
 0x118   :  { %v130_v34 = vsel %vm29_vm0, %v128_v33, 0.0 }
 0x119   :  { %131 = vadd.xlane.f32.xlu1 %v130_v34  ;;  %v116_v35 = vpop.xlane.xlu0 %115 }
 0x11a   :  { %v125_v36 = vmul.f32 %v123_v29, %v116_v35 }
 0x11c   :  { %v127_v37 = vsub.f32 %v110_v21, %v125_v36 }
 0x11e   :  { %v129_v38 = vmul.f32 %v127_v37, %v127_v37 }
 0x120   :  { %v133_v39 = vsel %vm29_vm0, %v129_v38, 0.0 }
 0x121   :  { %134 = vadd.xlane.f32.xlu1 %v133_v39 }
 0x18c   :  { %v132_v40 = vpop.xlane.xlu1 %131 }
 0x18d   :  { %v136_v41 = vmul.f32 %v132_v40, %v123_v29 }
 0x18f   :  { %v138_v42 = vadd.f32 1e-05, %v136_v41 }
 0x191   :  { %230 = vrsqrt.f32 %v138_v42  ;;  %vm146_vm4 = vweird.f32 %v138_v42 }
 0x194   :  { %v135_v43 = vpop.xlane.xlu1 %134 }
 0x195   :  { %v137_v44 = vmul.f32 %v135_v43, %v123_v29 }
 0x197   :  { %v231_v45 = vpop.eup %230  ;;  %v139_v46 = vadd.f32 1e-05, %v137_v44 }
 0x198   :  { %v141_v47 = vmul.f32 %v231_v45, %v138_v42  ;;  %vm147_vm3 = vweird.f32 %v231_v45 }
 0x199   :  { %232 = vrsqrt.f32 %v139_v46  ;;  %vm148_vm5 = vmor %vm146_vm4, %vm147_vm3  ;;  %vm156_vm7 = vweird.f32 %v139_v46 }
 0x19a   :  { %v142_v48 = vmul.f32 %v231_v45, %v141_v47 }
 0x19c   :  { %v143_v49 = vmul.f32 0.5, %v142_v48 }
 0x19e   :  { %v144_v50 = vsub.f32 1.5, %v143_v49 }
 0x19f   :  { %v233_v51 = vpop.eup %232 }
 0x1a0   :  { %v145_v52 = vmul.f32 %v231_v45, %v144_v50  ;;  %v151_v53 = vmul.f32 %v233_v51, %v139_v46  ;;  %vm157_vm6 = vweird.f32 %v233_v51 }
 0x1a1   :  { %vm158_vm8 = vmor %vm156_vm7, %vm157_vm6 }
 0x1a2   :  { %v149_v55 = vsel %vm148_vm5, %v231_v45, %v145_v52  ;;  %v152_v56 = vmul.f32 %v233_v51, %v151_v53 }
 0x1a3   :  { %v160_v57 = vmul.f32 %v149_v55, %v126_v32 }
 0x1a4   :  { %v153_v59 = vmul.f32 0.5, %v152_v56 }
 0x1a5   :  { %v166_v60 = vmul.f32 %v226_v54, %v160_v57 }
 0x1a6   :  { %v154_v61 = vsub.f32 1.5, %v153_v59 }
 0x1a7   :  { %v172_v62 = vadd.f32 %v227_v58, %v166_v60 }
 0x1a8   :  { %v155_v63 = vmul.f32 %v233_v51, %v154_v61 }
 0x1a9   :  { %174 = vst.msk [vmem:[#allocation3] sm:$0xff] %vm29_vm0, %v172_v62 }
 0x1aa   :  { %v159_v0 = vsel %vm158_vm8, %v233_v51, %v155_v63 }
 0x1ab   :  { %v161_v1 = vmul.f32 %v159_v0, %v127_v37 }
 0x1ad   :  { %v167_v2 = vmul.f32 %v226_v54, %v161_v1 }
 0x1af   :  { %v173_v3 = vadd.f32 %v227_v58, %v167_v2 }
 0x1b1   :  { %175 = vst.msk [vmem:[#allocation3 + $0x8] sm:$0xff] %vm29_vm0, %v173_v3 }
 0x1b2   :  { %188 = dma.vmem_to_hbm [thread:$0]  %s181_s13, 256, %s183_s16, [#allocation4], %s263_s5, %s263_s5, %s264_s17  }
 0x1b3   :  { %258 = dma.done.wait [#allocation4], 256  }
 0x1b4   :  { %259 = vsyncadd [#allocation4], 4294967040 }
 0x1b5   :  { %193 = vsyncpa [#allocation4], 1 }

</bundles_post_ra>
